<compile_context>
chip_gen: v7x
topology: tpu7x:2x2x1
jax: 0.10.0
libtpu: 0.0.40
codegen_flags: <defaults>
</compile_context>

<pallas_src>
import functools
import math

import jax
import jax.numpy as jnp
from jax import lax
from jax.experimental import pallas as pl
from jax.experimental.pallas import tpu as pltpu


# ---------------------------------------------------------------------------
# small config (GPTConfig analogue, shrunk for the demo)
# ---------------------------------------------------------------------------
class Config:
    block_size = 16
    vocab_size = 256
    n_layer = 2
    n_head = 4
    n_embd = 32


# ---------------------------------------------------------------------------
# in-kernel helpers (pure jnp, traced inside the Pallas bodies) — f32 math
# ---------------------------------------------------------------------------
def _layernorm(x, w, b, eps=1e-5):
    mu = jnp.mean(x, axis=-1, keepdims=True)
    var = jnp.mean((x - mu) ** 2, axis=-1, keepdims=True)
    return (x - mu) * lax.rsqrt(var + eps) * w + b


def _gelu_tanh(x):
    # GELU(approximate='tanh')
    c = math.sqrt(2.0 / math.pi)
    return 0.5 * x * (1.0 + jnp.tanh(c * (x + 0.044715 * x * x * x)))


# ---------------------------------------------------------------------------
# fused transformer-stack kernel: grid = (row_tiles, n_layer)
#   - layer axis "arbitrary": x resident in the output VMEM block, per-layer
#     weight DMAs double-buffered behind compute
#   - row axis "parallel": shards row tiles across TensorCores (v7x)
#   - ln_f fused into the last layer's writeback
# ---------------------------------------------------------------------------
def blocks_kernel(mask_ref, lnf_ref, x_ref, vecs_ref,
                  wqkv_ref, wpro_ref, wfc_ref, wmp_ref,
                  o_ref, *, n_head, batch, seq):
    layer = pl.program_id(1)
    n_layer = pl.num_programs(1)

    # Layer 0: seed the resident accumulator (o_ref keeps the same block index
    # across the layer axis, so it stays in VMEM and is written back once).
    @pl.when(layer == 0)
    def _():
        o_ref[...] = x_ref[...]

    x = o_ref[...].astype(jnp.float32)            # (N, C) f32 residual
    N, C = x.shape
    hd = C // n_head
    scale = 1.0 / math.sqrt(hd)
    bf = jnp.bfloat16

    # one packed (8, 4C) block of per-layer LN params / biases (single DMA)
    vec = vecs_ref[...]
    ln1w, ln1b = vec[0:1, :C], vec[1:2, :C]
    ln2w, ln2b = vec[2:3, :C], vec[3:4, :C]
    attn_b = vec[4:5, :3 * C]
    proj_b = vec[5:6, :C]
    fc_b = vec[6:7, :4 * C]
    mproj_b = vec[7:8, :C]

    # ---- attention branch ---------------------------------------------------
    h = _layernorm(x, ln1w, ln1b)
    qkv = jnp.dot(h.astype(bf), wqkv_ref[...],
                  preferred_element_type=jnp.float32) + attn_b        # (N, 3C)
    qkv = qkv.reshape(batch, seq, 3 * C)

    def to_heads(a):                                  # (B, T, C) -> (B*H, T, hd)
        a = a.reshape(batch, seq, n_head, hd)
        a = jnp.transpose(a, (0, 2, 1, 3))
        return a.reshape(batch * n_head, seq, hd).astype(bf)

    q = to_heads(qkv[..., 0 * C:1 * C])
    k = to_heads(qkv[..., 1 * C:2 * C])
    v = to_heads(qkv[..., 2 * C:3 * C])

    s = jnp.einsum('bqd,bkd->bqk', q, k,
                   preferred_element_type=jnp.float32) * scale
    s = s + mask_ref[...][None, :, :]                 # additive causal bias
    m = jnp.max(s, axis=-1, keepdims=True)
    p = jnp.exp(s - m)
    p = p * pl.reciprocal(jnp.sum(p, axis=-1, keepdims=True), approx=True)
    y = jnp.einsum('bqk,bkd->bqd', p.astype(bf), v,
                   preferred_element_type=jnp.float32)                # (B*H,T,hd)
    y = (y.reshape(batch, n_head, seq, hd)
          .transpose(0, 2, 1, 3)
          .reshape(N, C))
    y = jnp.dot(y.astype(bf), wpro_ref[...],
                preferred_element_type=jnp.float32) + proj_b
    x = x + y                                         # residual in f32

    # ---- MLP branch ----------------------------------------------------------
    h2 = _layernorm(x, ln2w, ln2b)
    ff = jnp.dot(h2.astype(bf), wfc_ref[...],
                 preferred_element_type=jnp.float32) + fc_b
    ff = _gelu_tanh(ff)
    ff = jnp.dot(ff.astype(bf), wmp_ref[...],
                 preferred_element_type=jnp.float32) + mproj_b
    x = x + ff

    @pl.when(layer < n_layer - 1)
    def _():
        o_ref[...] = x.astype(o_ref.dtype)

    @pl.when(layer == n_layer - 1)
    def _():
        # fused final LayerNorm — lm_head kernel then only does the matmul
        o_ref[...] = _layernorm(x, lnf_ref[0:1, :], lnf_ref[1:2, :]
                                ).astype(o_ref.dtype)


def blocks_call(x, blk, vecs, lnf, mask_bias, n_head, batch, seq, row_tiles=1):
    N, C = x.shape
    L = blk['attn_w'].shape[0]
    R = row_tiles
    assert batch % R == 0, "row tiles must contain whole sequences"
    rows = N // R

    def whole(shape):
        n = len(shape)
        return pl.BlockSpec(shape, lambda r, l: (0,) * n)      # fetched once

    def per_layer(shape):
        n = len(shape)
        # leading layer axis squeezed; layer l+1 DMA overlaps layer l compute
        return pl.BlockSpec((None,) + shape, lambda r, l: (l,) + (0,) * n)

    row_spec = pl.BlockSpec((rows, C), lambda r, l: (r, 0))

    kernel = functools.partial(blocks_kernel, n_head=n_head,
                               batch=batch // R, seq=seq)
    return pl.pallas_call(
        kernel,
        out_shape=jax.ShapeDtypeStruct((N, C), jnp.float32),
        grid=(R, L),
        in_specs=[
            whole(mask_bias.shape),              # causal additive bias (T, T)
            whole(lnf.shape),                    # fused ln_f params (2, C)
            row_spec,                            # x (row tile)
            per_layer(vecs.shape[1:]),           # packed LN/bias vectors (8, 4C)
            per_layer(blk['attn_w'].shape[1:]),  # c_attn  (C, 3C)
            per_layer(blk['proj_w'].shape[1:]),  # attn c_proj (C, C)
            per_layer(blk['fc_w'].shape[1:]),    # c_fc    (C, 4C)
            per_layer(blk['mproj_w'].shape[1:]),  # mlp c_proj (4C, C)
        ],
        out_specs=row_spec,                      # same block across layers → resident
        compiler_params=pltpu.CompilerParams(
            # row axis parallel (v7x: row_tiles=2 → both TCs), layer axis sequential
            dimension_semantics=("parallel", "arbitrary"),
            # NOTE: at real GPT-2 scale re-derive per generation; on v7x (64 MiB)
            # tile fc_w/mproj_w over the 4C axis instead of only raising this.
            vmem_limit_bytes=64 * 1024 * 1024),
    )(mask_bias, lnf, x, vecs,
      blk['attn_w'], blk['proj_w'], blk['fc_w'], blk['mproj_w'])


# ---------------------------------------------------------------------------
# lm_head (tied wte, pre-transposed to (C, V)), tiled over vocab
# ---------------------------------------------------------------------------
def head_kernel(x_ref, wt_ref, o_ref):
    # x is already ln_f'd inside the blocks kernel
    o_ref[...] = jnp.dot(x_ref[...].astype(jnp.bfloat16), wt_ref[...],
                         preferred_element_type=jnp.float32).astype(o_ref.dtype)


def head_call(x, wte_t, tile_v=None):
    N, C = x.shape
    V = wte_t.shape[1]
    if tile_v is None:
        # >=512 at real vocab sizes (HBM roofline + 256-wide MXU on v6e/v7x)
        tile_v = min(512, V)
    assert V % tile_v == 0
    return pl.pallas_call(
        head_kernel,
        out_shape=jax.ShapeDtypeStruct((N, V), jnp.float32),
        grid=(V // tile_v,),
        in_specs=[
            pl.BlockSpec((N, C), lambda v: (0, 0)),
            pl.BlockSpec((C, tile_v), lambda v: (0, v)),   # lane-dense weight tile
        ],
        out_specs=pl.BlockSpec((N, tile_v), lambda v: (0, v)),  # lane-dense logits
        compiler_params=pltpu.CompilerParams(
            dimension_semantics=("parallel",),
            vmem_limit_bytes=64 * 1024 * 1024),
    )(x, wte_t)


# ---------------------------------------------------------------------------
# deterministic parameter init (mirrors GPT._weight_init shapes/stds)
# MXU weights stored bf16; LN params / biases stay f32.
# ---------------------------------------------------------------------------
def init_params(key, cfg):
    C, V, L = cfg.n_embd, cfg.vocab_size, cfg.n_layer
    std = 0.2
    std_proj = std * (2 * L) ** -0.5
    keys = iter(jax.random.split(key, 6))

    def nrm(shape, s):
        return (s * jax.random.normal(next(keys), shape, dtype=jnp.float32)
                ).astype(jnp.bfloat16)

    return {
        # wte tied with lm_head; torch apply() order leaves it at std=0.2
        'wte': nrm((V, C), std),
        'wpe': nrm((cfg.block_size, C), 0.02),
        'ln_f_w': jnp.ones((1, C), jnp.float32),
        'ln_f_b': jnp.zeros((1, C), jnp.float32),
        'blocks': {
            'ln1_w': jnp.ones((L, 1, C), jnp.float32),
            'ln1_b': jnp.zeros((L, 1, C), jnp.float32),
            'attn_w': nrm((L, C, 3 * C), std),
            'attn_b': jnp.zeros((L, 1, 3 * C), jnp.float32),
            'proj_w': nrm((L, C, C), std_proj),
            'proj_b': jnp.zeros((L, 1, C), jnp.float32),
            'ln2_w': jnp.ones((L, 1, C), jnp.float32),
            'ln2_b': jnp.zeros((L, 1, C), jnp.float32),
            'fc_w': nrm((L, C, 4 * C), std),
            'fc_b': jnp.zeros((L, 1, 4 * C), jnp.float32),
            'mproj_w': nrm((L, 4 * C, C), std_proj),
            'mproj_b': jnp.zeros((L, 1, C), jnp.float32),
        },
    }


def _pack_layer_vecs(blk, C):
    """Pack the 8 small per-layer vectors into one (L, 8, 4C) array (1 DMA/layer)."""
    W = 4 * C

    def pad(a):
        return jnp.pad(a, ((0, 0), (0, 0), (0, W - a.shape[-1])))

    rows = [blk['ln1_w'], blk['ln1_b'], blk['ln2_w'], blk['ln2_b'],
            blk['attn_b'], blk['proj_b'], blk['fc_b'], blk['mproj_b']]
    return jnp.concatenate([pad(r) for r in rows], axis=1)   # (L, 8, 4C) f32


# ---------------------------------------------------------------------------
# GPT.forward(idx) -> logits
# ---------------------------------------------------------------------------
def gpt_forward(idx, params, cfg, row_tiles=1):
    B, T = idx.shape
    assert T <= cfg.block_size
    C = cfg.n_embd
    # embedding gathers stay in plain JAX (glue)
    tok = jnp.take(params['wte'], idx, axis=0).astype(jnp.float32)   # (B, T, C)
    pos = params['wpe'][:T].astype(jnp.float32)                      # (T, C)
    x = (tok + pos[None, :, :]).reshape(B * T, C)

    # additive causal bias, built once outside the kernel
    rows = lax.broadcasted_iota(jnp.int32, (T, T), 0)
    cols = lax.broadcasted_iota(jnp.int32, (T, T), 1)
    mask_bias = jnp.where(rows >= cols, 0.0, -1e30).astype(jnp.float32)

    vecs = _pack_layer_vecs(params['blocks'], C)
    lnf = jnp.concatenate([params['ln_f_w'], params['ln_f_b']], axis=0)  # (2, C)

    x = blocks_call(x, params['blocks'], vecs, lnf, mask_bias,
                    cfg.n_head, B, T, row_tiles=row_tiles)

    # tied lm_head: lane-dense (C, V) layout (at real scale transpose at init)
    wte_t = params['wte'].T
    logits = head_call(x, wte_t)
    return logits.reshape(B, T, cfg.vocab_size)


# ---------------------------------------------------------------------------
# pure-JAX reference (same params, same bf16 matmul / f32 elementwise recipe)
# ---------------------------------------------------------------------------
def gpt_forward_ref(idx, params, cfg):
    B, T = idx.shape
    C, H = cfg.n_embd, cfg.n_head
    hd = C // H
    bf = jnp.bfloat16
    x = (jnp.take(params['wte'], idx, axis=0).astype(jnp.float32)
         + params['wpe'][:T].astype(jnp.float32)[None])
    p = params['blocks']
    L = p['attn_w'].shape[0]
    mask = jnp.tril(jnp.ones((T, T), bool))
    for l in range(L):
        h = _layernorm(x, p['ln1_w'][l], p['ln1_b'][l])
        qkv = jnp.einsum('btc,cd->btd', h.astype(bf), p['attn_w'][l],
                         preferred_element_type=jnp.float32) + p['attn_b'][l]
        q, k, v = jnp.split(qkv, 3, axis=-1)
        q = q.reshape(B, T, H, hd).transpose(0, 2, 1, 3)
        k = k.reshape(B, T, H, hd).transpose(0, 2, 1, 3)
        v = v.reshape(B, T, H, hd).transpose(0, 2, 1, 3)
        s = jnp.einsum('bhqd,bhkd->bhqk', q.astype(bf), k.astype(bf),
                       preferred_element_type=jnp.float32) / math.sqrt(hd)
        s = jnp.where(mask, s, -1e30)
        a = jax.nn.softmax(s, axis=-1)
        y = jnp.einsum('bhqk,bhkd->bhqd', a.astype(bf), v.astype(bf),
                       preferred_element_type=jnp.float32)
        y = y.transpose(0, 2, 1, 3).reshape(B, T, C)
        x = x + (jnp.einsum('btc,cd->btd', y.astype(bf), p['proj_w'][l],
                            preferred_element_type=jnp.float32) + p['proj_b'][l])
        h2 = _layernorm(x, p['ln2_w'][l], p['ln2_b'][l])
        ff = _gelu_tanh(jnp.einsum('btc,cd->btd', h2.astype(bf), p['fc_w'][l],
                                   preferred_element_type=jnp.float32) + p['fc_b'][l])
        x = x + (jnp.einsum('btc,cd->btd', ff.astype(bf), p['mproj_w'][l],
                            preferred_element_type=jnp.float32) + p['mproj_b'][l])
    h = _layernorm(x, params['ln_f_w'], params['ln_f_b'])
    return jnp.einsum('btc,vc->btv', h.astype(bf), params['wte'],
                      preferred_element_type=jnp.float32)


if __name__ == "__main__":
    cfg = Config()
    key = jax.random.PRNGKey(0)
    pkey, ikey = jax.random.split(key)
    params = init_params(pkey, cfg)

    B, T = 2, 8
    idx = jax.random.randint(ikey, (B, T), 0, cfg.vocab_size, dtype=jnp.int32)

    # row_tiles=1 for v5e/v6e (single TC); set 2 on v7x to use both TensorCores.
    fwd = jax.jit(lambda i, prm: gpt_forward(i, prm, cfg, row_tiles=1))
    logits = jax.block_until_ready(fwd(idx, params))

    ref = jax.block_until_ready(
        jax.jit(lambda i, prm: gpt_forward_ref(i, prm, cfg))(idx, params))

    assert logits.shape == (B, T, cfg.vocab_size)
    max_err = float(jnp.max(jnp.abs(logits - ref)))
    assert jnp.allclose(logits, ref, atol=5e-2, rtol=5e-2), f"mismatch, max|d|={max_err}"

    print("KERNEL_OK")
</pallas_src>

<mosaic_0001>
module attributes {stable_mosaic.version = 11 : i64} {
  func.func @head_kernel(%arg0: i32, %arg1: memref<16x32xf32, #tpu.memory_space<vmem>>, %arg2: memref<32x256xbf16, #tpu.memory_space<vmem>>, %arg3: memref<16x256xf32, #tpu.memory_space<vmem>>) attributes {dimension_semantics = [#tpu.dimension_semantics<parallel>], iteration_bounds = array<i64: 1>, scalar_prefetch = 0 : i64, scratch_operands = 0 : i64, tpu.core_type = #tpu.core_type<tc>, window_params = [{pipeline_mode = #tpu.pipeline_mode<synchronous>, transform_indices = @transform_0, window_bounds = array<i64: 16, 32>}, {transform_indices = @transform_1, window_bounds = array<i64: 32, 256>}, {transform_indices = @transform_2, window_bounds = array<i64: 16, 256>}]} {
    %c0 = arith.constant 0 : index
    %c0_0 = arith.constant 0 : index
    %0 = vector.load %arg1[%c0, %c0_0] : memref<16x32xf32, #tpu.memory_space<vmem>>, vector<16x32xf32>
    %1 = arith.truncf %0 : vector<16x32xf32> to vector<16x32xbf16>
    %c0_1 = arith.constant 0 : index
    %c0_2 = arith.constant 0 : index
    %2 = vector.load %arg2[%c0_1, %c0_2] : memref<32x256xbf16, #tpu.memory_space<vmem>>, vector<32x256xbf16>
    %cst = arith.constant dense<0.000000e+00> : vector<16x256xf32>
    %3 = tpu.matmul %1, %2, %cst {dimension_numbers = #tpu.dot_dimension_numbers<[1], [0], [0], [1], [0, 0, 1, 1], [], []>} : vector<16x32xbf16>, vector<32x256xbf16>, vector<16x256xf32> -> vector<16x256xf32>
    %c0_3 = arith.constant 0 : index
    %c0_4 = arith.constant 0 : index
    %4 = vector.load %arg3[%c0_3, %c0_4] : memref<16x256xf32, #tpu.memory_space<vmem>>, vector<16x256xf32>
    tpu.vector_store %arg3[%c0_3, %c0_4], %3 {strides = array<i32>} : memref<16x256xf32, #tpu.memory_space<vmem>>, vector<16x256xf32>,
    return
  }
  func.func @transform_0(%arg0: i32) -> (i32, i32) {
    %c0_i32 = arith.constant 0 : i32
    %c0_i32_0 = arith.constant 0 : i32
    %c0_i32_1 = arith.constant 0 : i32
    return %c0_i32, %c0_i32_0 : i32, i32
  }
  func.func @transform_1(%arg0: i32) -> (i32, i32) {
    %c0_i32 = arith.constant 0 : i32
    %c0_i32_0 = arith.constant 0 : i32
    return %c0_i32, %arg0 : i32, i32
  }
  func.func @transform_2(%arg0: i32) -> (i32, i32) {
    %c0_i32 = arith.constant 0 : i32
    %c0_i32_0 = arith.constant 0 : i32
    return %c0_i32, %arg0 : i32, i32
  }
}

module attributes {stable_mosaic.version = 11 : i64} {
  func.func @blocks_kernel(%arg0: i32, %arg1: i32, %arg2: memref<8x8xf32, #tpu.memory_space<vmem>>, %arg3: memref<2x32xf32, #tpu.memory_space<vmem>>, %arg4: memref<16x32xf32, #tpu.memory_space<vmem>>, %arg5: memref<1x8x128xf32, #tpu.memory_space<vmem>>, %arg6: memref<1x32x96xbf16, #tpu.memory_space<vmem>>, %arg7: memref<1x32x32xbf16, #tpu.memory_space<vmem>>, %arg8: memref<1x32x128xbf16, #tpu.memory_space<vmem>>, %arg9: memref<1x128x32xbf16, #tpu.memory_space<vmem>>, %arg10: memref<16x32xf32, #tpu.memory_space<vmem>>) attributes {dimension_semantics = [#tpu.dimension_semantics<parallel>, #tpu.dimension_semantics<arbitrary>], iteration_bounds = array<i64: 1, 2>, scalar_prefetch = 0 : i64, scratch_operands = 0 : i64, tpu.core_type = #tpu.core_type<tc>, window_params = [{pipeline_mode = #tpu.pipeline_mode<synchronous>, transform_indices = @transform_0, window_bounds = array<i64: 8, 8>}, {pipeline_mode = #tpu.pipeline_mode<synchronous>, transform_indices = @transform_1, window_bounds = array<i64: 2, 32>}, {transform_indices = @transform_2, window_bounds = array<i64: 16, 32>}, {transform_indices = @transform_3, window_bounds = array<i64: 1, 8, 128>}, {transform_indices = @transform_4, window_bounds = array<i64: 1, 32, 96>}, {transform_indices = @transform_5, window_bounds = array<i64: 1, 32, 32>}, {transform_indices = @transform_6, window_bounds = array<i64: 1, 32, 128>}, {transform_indices = @transform_7, window_bounds = array<i64: 1, 128, 32>}, {transform_indices = @transform_8, window_bounds = array<i64: 16, 32>}]} {
    %c0_i32 = arith.constant 0 : i32
    %0 = arith.cmpi eq, %arg1, %c0_i32 : i32
    %1 = arith.extui %0 : i1 to i32
    %c0_i32_0 = arith.constant 0 : i32
    %2 = arith.cmpi ne, %1, %c0_i32_0 : i32
    scf.if %2 {
      %c0_44 = arith.constant 0 : index
      %c0_45 = arith.constant 0 : index
      %141 = vector.load %arg4[%c0_44, %c0_45] : memref<16x32xf32, #tpu.memory_space<vmem>>, vector<16x32xf32>
      %c0_46 = arith.constant 0 : index
      %c0_47 = arith.constant 0 : index
      %142 = vector.load %arg10[%c0_46, %c0_47] : memref<16x32xf32, #tpu.memory_space<vmem>>, vector<16x32xf32>
      tpu.vector_store %arg10[%c0_46, %c0_47], %141 {strides = array<i32>} : memref<16x32xf32, #tpu.memory_space<vmem>>, vector<16x32xf32>,
    } else {
    }
    %c0 = arith.constant 0 : index
    %c0_1 = arith.constant 0 : index
    %3 = vector.load %arg10[%c0, %c0_1] : memref<16x32xf32, #tpu.memory_space<vmem>>, vector<16x32xf32>
    %c0_2 = arith.constant 0 : index
    %c0_3 = arith.constant 0 : index
    %c0_4 = arith.constant 0 : index
    %4 = vector.load %arg5[%c0_2, %c0_3, %c0_4] : memref<1x8x128xf32, #tpu.memory_space<vmem>>, vector<1x8x128xf32>
    %5 = vector.shape_cast %4 : vector<1x8x128xf32> to vector<8x128xf32>
    %6 = vector.extract_strided_slice %5 {offsets = [0, 0], sizes = [1, 32], strides = [1, 1]} : vector<8x128xf32> to vector<1x32xf32>
    %7 = vector.extract_strided_slice %5 {offsets = [1, 0], sizes = [1, 32], strides = [1, 1]} : vector<8x128xf32> to vector<1x32xf32>
    %8 = vector.extract_strided_slice %5 {offsets = [2, 0], sizes = [1, 32], strides = [1, 1]} : vector<8x128xf32> to vector<1x32xf32>
    %9 = vector.extract_strided_slice %5 {offsets = [3, 0], sizes = [1, 32], strides = [1, 1]} : vector<8x128xf32> to vector<1x32xf32>
    %10 = vector.extract_strided_slice %5 {offsets = [4, 0], sizes = [1, 96], strides = [1, 1]} : vector<8x128xf32> to vector<1x96xf32>
    %11 = vector.extract_strided_slice %5 {offsets = [5, 0], sizes = [1, 32], strides = [1, 1]} : vector<8x128xf32> to vector<1x32xf32>
    %12 = vector.extract_strided_slice %5 {offsets = [6, 0], sizes = [1, 128], strides = [1, 1]} : vector<8x128xf32> to vector<1x128xf32>
    %13 = vector.extract_strided_slice %5 {offsets = [7, 0], sizes = [1, 32], strides = [1, 1]} : vector<8x128xf32> to vector<1x32xf32>
    %cst = arith.constant dense<0.000000e+00> : vector<16xf32>
    %14 = vector.multi_reduction <add>, %3, %cst [1] : vector<16x32xf32> to vector<16xf32>
    %15 = vector.shape_cast %14 : vector<16xf32> to vector<16x1xf32>
    %cst_5 = arith.constant 3.200000e+01 : f32
    %16 = vector.broadcast %cst_5 : f32 to vector<16x1xf32>
    %17 = arith.divf %15, %16 : vector<16x1xf32>
    %18 = vector.broadcast %17 : vector<16x1xf32> to vector<16x32xf32>
    %19 = arith.subf %3, %18 : vector<16x32xf32>
    %20 = arith.mulf %19, %19 : vector<16x32xf32>
    %cst_6 = arith.constant dense<0.000000e+00> : vector<16xf32>
    %21 = vector.multi_reduction <add>, %20, %cst_6 [1] : vector<16x32xf32> to vector<16xf32>
    %22 = vector.shape_cast %21 : vector<16xf32> to vector<16x1xf32>
    %cst_7 = arith.constant 3.200000e+01 : f32
    %23 = vector.broadcast %cst_7 : f32 to vector<16x1xf32>
    %24 = arith.divf %22, %23 : vector<16x1xf32>
    %25 = vector.broadcast %17 : vector<16x1xf32> to vector<16x32xf32>
    %26 = arith.subf %3, %25 : vector<16x32xf32>
    %cst_8 = arith.constant 9.99999974E-6 : f32
    %27 = vector.broadcast %cst_8 : f32 to vector<16x1xf32>
    %28 = arith.addf %24, %27 : vector<16x1xf32>
    %29 = math.rsqrt %28 : vector<16x1xf32>
    %30 = vector.broadcast %29 : vector<16x1xf32> to vector<16x32xf32>
    %31 = arith.mulf %26, %30 : vector<16x32xf32>
    %32 = vector.broadcast %6 : vector<1x32xf32> to vector<16x32xf32>
    %33 = arith.mulf %31, %32 : vector<16x32xf32>
    %34 = vector.broadcast %7 : vector<1x32xf32> to vector<16x32xf32>
    %35 = arith.addf %33, %34 : vector<16x32xf32>
    %36 = arith.truncf %35 : vector<16x32xf32> to vector<16x32xbf16>
    %c0_9 = arith.constant 0 : index
    %c0_10 = arith.constant 0 : index
    %c0_11 = arith.constant 0 : index
    %37 = vector.load %arg6[%c0_9, %c0_10, %c0_11] : memref<1x32x96xbf16, #tpu.memory_space<vmem>>, vector<1x32x96xbf16>
    %38 = vector.shape_cast %37 : vector<1x32x96xbf16> to vector<32x96xbf16>
    %cst_12 = arith.constant dense<0.000000e+00> : vector<16x96xf32>
    %39 = tpu.matmul %36, %38, %cst_12 {dimension_numbers = #tpu.dot_dimension_numbers<[1], [0], [0], [1], [0, 0, 1, 1], [], []>} : vector<16x32xbf16>, vector<32x96xbf16>, vector<16x96xf32> -> vector<16x96xf32>
    %40 = vector.broadcast %10 : vector<1x96xf32> to vector<16x96xf32>
    %41 = arith.addf %39, %40 : vector<16x96xf32>
    %42 = vector.shape_cast %41 : vector<16x96xf32> to vector<2x8x96xf32>
    %43 = vector.extract_strided_slice %42 {offsets = [0, 0, 0], sizes = [2, 8, 32], strides = [1, 1, 1]} : vector<2x8x96xf32> to vector<2x8x32xf32>
    %44 = vector.shape_cast %43 : vector<2x8x32xf32> to vector<2x8x4x8xf32>
    %45 = tpu.transpose %44, [0, 2, 1, 3] : vector<2x8x4x8xf32> -> vector<2x4x8x8xf32>
    %46 = vector.shape_cast %45 : vector<2x4x8x8xf32> to vector<8x8x8xf32>
    %47 = arith.truncf %46 : vector<8x8x8xf32> to vector<8x8x8xbf16>
    %48 = vector.extract_strided_slice %42 {offsets = [0, 0, 32], sizes = [2, 8, 32], strides = [1, 1, 1]} : vector<2x8x96xf32> to vector<2x8x32xf32>
    %49 = vector.shape_cast %48 : vector<2x8x32xf32> to vector<2x8x4x8xf32>
    %50 = tpu.transpose %49, [0, 2, 1, 3] : vector<2x8x4x8xf32> -> vector<2x4x8x8xf32>
    %51 = vector.shape_cast %50 : vector<2x4x8x8xf32> to vector<8x8x8xf32>
    %52 = arith.truncf %51 : vector<8x8x8xf32> to vector<8x8x8xbf16>
    %53 = vector.extract_strided_slice %42 {offsets = [0, 0, 64], sizes = [2, 8, 32], strides = [1, 1, 1]} : vector<2x8x96xf32> to vector<2x8x32xf32>
    %54 = vector.shape_cast %53 : vector<2x8x32xf32> to vector<2x8x4x8xf32>
    %55 = tpu.transpose %54, [0, 2, 1, 3] : vector<2x8x4x8xf32> -> vector<2x4x8x8xf32>
    %56 = vector.shape_cast %55 : vector<2x4x8x8xf32> to vector<8x8x8xf32>
    %57 = arith.truncf %56 : vector<8x8x8xf32> to vector<8x8x8xbf16>
    "tpu.trace_start"() <{level = 10 : i32, message = "bqd,bkd->bqk"}> : () -> ()
    %cst_13 = arith.constant dense<0.000000e+00> : vector<8x8x8xf32>
    %58 = tpu.matmul %47, %52, %cst_13 {dimension_numbers = #tpu.dot_dimension_numbers<[2], [2], [1], [1], [0, 0, 0, 1, 1, 1], [0], [0]>} : vector<8x8x8xbf16>, vector<8x8x8xbf16>, vector<8x8x8xf32> -> vector<8x8x8xf32>
    "tpu.trace_stop"() : () -> ()
    %cst_14 = arith.constant 0.353553385 : f32
    %59 = vector.broadcast %cst_14 : f32 to vector<8x8x8xf32>
    %60 = arith.mulf %58, %59 : vector<8x8x8xf32>
    %c0_15 = arith.constant 0 : index
    %c0_16 = arith.constant 0 : index
    %61 = vector.load %arg2[%c0_15, %c0_16] : memref<8x8xf32, #tpu.memory_space<vmem>>, vector<8x8xf32>
    %62 = vector.shape_cast %61 : vector<8x8xf32> to vector<1x8x8xf32>
    %63 = vector.broadcast %62 : vector<1x8x8xf32> to vector<8x8x8xf32>
    %64 = arith.addf %60, %63 : vector<8x8x8xf32>
    %cst_17 = arith.constant dense<0xFF800000> : vector<8x8xf32>
    %65 = vector.multi_reduction <maximumf>, %64, %cst_17 [2] : vector<8x8x8xf32> to vector<8x8xf32>
    %66 = vector.shape_cast %65 : vector<8x8xf32> to vector<8x8x1xf32>
    %67 = vector.broadcast %66 : vector<8x8x1xf32> to vector<8x8x8xf32>
    %68 = arith.subf %64, %67 : vector<8x8x8xf32>
    %69 = math.exp %68 : vector<8x8x8xf32>
    %cst_18 = arith.constant dense<0.000000e+00> : vector<8x8xf32>
    %70 = vector.multi_reduction <add>, %69, %cst_18 [2] : vector<8x8x8xf32> to vector<8x8xf32>
    %71 = vector.shape_cast %70 : vector<8x8xf32> to vector<8x8x1xf32>
    %72 = tpu.reciprocal %71 {approx = true} : vector<8x8x1xf32> -> vector<8x8x1xf32>
    %73 = vector.broadcast %72 : vector<8x8x1xf32> to vector<8x8x8xf32>
    %74 = arith.mulf %69, %73 : vector<8x8x8xf32>
    %75 = arith.truncf %74 : vector<8x8x8xf32> to vector<8x8x8xbf16>
    "tpu.trace_start"() <{level = 10 : i32, message = "bqk,bkd->bqd"}> : () -> ()
    %cst_19 = arith.constant dense<0.000000e+00> : vector<8x8x8xf32>
    %76 = tpu.matmul %75, %57, %cst_19 {dimension_numbers = #tpu.dot_dimension_numbers<[2], [1], [1], [2], [0, 0, 0, 1, 1, 2], [0], [0]>} : vector<8x8x8xbf16>, vector<8x8x8xbf16>, vector<8x8x8xf32> -> vector<8x8x8xf32>
    "tpu.trace_stop"() : () -> ()
    %77 = vector.shape_cast %76 : vector<8x8x8xf32> to vector<2x4x8x8xf32>
    %78 = tpu.transpose %77, [0, 2, 1, 3] : vector<2x4x8x8xf32> -> vector<2x8x4x8xf32>
    %79 = vector.shape_cast %78 : vector<2x8x4x8xf32> to vector<16x32xf32>
    %80 = arith.truncf %79 : vector<16x32xf32> to vector<16x32xbf16>
    %c0_20 = arith.constant 0 : index
    %c0_21 = arith.constant 0 : index
    %c0_22 = arith.constant 0 : index
    %81 = vector.load %arg7[%c0_20, %c0_21, %c0_22] : memref<1x32x32xbf16, #tpu.memory_space<vmem>>, vector<1x32x32xbf16>
    %82 = vector.shape_cast %81 : vector<1x32x32xbf16> to vector<32x32xbf16>
    %cst_23 = arith.constant dense<0.000000e+00> : vector<16x32xf32>
    %83 = tpu.matmul %80, %82, %cst_23 {dimension_numbers = #tpu.dot_dimension_numbers<[1], [0], [0], [1], [0, 0, 1, 1], [], []>} : vector<16x32xbf16>, vector<32x32xbf16>, vector<16x32xf32> -> vector<16x32xf32>
    %84 = vector.broadcast %11 : vector<1x32xf32> to vector<16x32xf32>
    %85 = arith.addf %83, %84 : vector<16x32xf32>
    %86 = arith.addf %3, %85 : vector<16x32xf32>
    %cst_24 = arith.constant dense<0.000000e+00> : vector<16xf32>
    %87 = vector.multi_reduction <add>, %86, %cst_24 [1] : vector<16x32xf32> to vector<16xf32>
    %88 = vector.shape_cast %87 : vector<16xf32> to vector<16x1xf32>
    %cst_25 = arith.constant 3.200000e+01 : f32
    %89 = vector.broadcast %cst_25 : f32 to vector<16x1xf32>
    %90 = arith.divf %88, %89 : vector<16x1xf32>
    %91 = vector.broadcast %90 : vector<16x1xf32> to vector<16x32xf32>
    %92 = arith.subf %86, %91 : vector<16x32xf32>
    %93 = arith.mulf %92, %92 : vector<16x32xf32>
    %cst_26 = arith.constant dense<0.000000e+00> : vector<16xf32>
    %94 = vector.multi_reduction <add>, %93, %cst_26 [1] : vector<16x32xf32> to vector<16xf32>
    %95 = vector.shape_cast %94 : vector<16xf32> to vector<16x1xf32>
    %cst_27 = arith.constant 3.200000e+01 : f32
    %96 = vector.broadcast %cst_27 : f32 to vector<16x1xf32>
    %97 = arith.divf %95, %96 : vector<16x1xf32>
    %98 = vector.broadcast %90 : vector<16x1xf32> to vector<16x32xf32>
    %99 = arith.subf %86, %98 : vector<16x32xf32>
    %cst_28 = arith.constant 9.99999974E-6 : f32
    %100 = vector.broadcast %cst_28 : f32 to vector<16x1xf32>
    %101 = arith.addf %97, %100 : vector<16x1xf32>
    %102 = math.rsqrt %101 : vector<16x1xf32>
    %103 = vector.broadcast %102 : vector<16x1xf32> to vector<16x32xf32>
    %104 = arith.mulf %99, %103 : vector<16x32xf32>
    %105 = vector.broadcast %8 : vector<1x32xf32> to vector<16x32xf32>
    %106 = arith.mulf %104, %105 : vector<16x32xf32>
    %107 = vector.broadcast %9 : vector<1x32xf32> to vector<16x32xf32>
    %108 = arith.addf %106, %107 : vector<16x32xf32>
    %109 = arith.truncf %108 : vector<16x32xf32> to vector<16x32xbf16>
    %c0_29 = arith.constant 0 : index
    %c0_30 = arith.constant 0 : index
    %c0_31 = arith.constant 0 : index
    %110 = vector.load %arg8[%c0_29, %c0_30, %c0_31] : memref<1x32x128xbf16, #tpu.memory_space<vmem>>, vector<1x32x128xbf16>
    %111 = vector.shape_cast %110 : vector<1x32x128xbf16> to vector<32x128xbf16>
    %cst_32 = arith.constant dense<0.000000e+00> : vector<16x128xf32>
    %112 = tpu.matmul %109, %111, %cst_32 {dimension_numbers = #tpu.dot_dimension_numbers<[1], [0], [0], [1], [0, 0, 1, 1], [], []>} : vector<16x32xbf16>, vector<32x128xbf16>, vector<16x128xf32> -> vector<16x128xf32>
    %113 = vector.broadcast %12 : vector<1x128xf32> to vector<16x128xf32>
    %114 = arith.addf %112, %113 : vector<16x128xf32>
    %cst_33 = arith.constant 5.000000e-01 : f32
    %115 = vector.broadcast %cst_33 : f32 to vector<16x128xf32>
    %116 = arith.mulf %115, %114 : vector<16x128xf32>
    %cst_34 = arith.constant 4.471500e-02 : f32
    %117 = vector.broadcast %cst_34 : f32 to vector<16x128xf32>
    %118 = arith.mulf %117, %114 : vector<16x128xf32>
    %119 = arith.mulf %118, %114 : vector<16x128xf32>
    %120 = arith.mulf %119, %114 : vector<16x128xf32>
    %121 = arith.addf %114, %120 : vector<16x128xf32>
    %cst_35 = arith.constant 0.797884583 : f32
    %122 = vector.broadcast %cst_35 : f32 to vector<16x128xf32>
    %123 = arith.mulf %122, %121 : vector<16x128xf32>
    %124 = math.tanh %123 : vector<16x128xf32>
    %cst_36 = arith.constant 1.000000e+00 : f32
    %125 = vector.broadcast %cst_36 : f32 to vector<16x128xf32>
    %126 = arith.addf %125, %124 : vector<16x128xf32>
    %127 = arith.mulf %116, %126 : vector<16x128xf32>
    %128 = arith.truncf %127 : vector<16x128xf32> to vector<16x128xbf16>
    %c0_37 = arith.constant 0 : index
    %c0_38 = arith.constant 0 : index
    %c0_39 = arith.constant 0 : index
    %129 = vector.load %arg9[%c0_37, %c0_38, %c0_39] : memref<1x128x32xbf16, #tpu.memory_space<vmem>>, vector<1x128x32xbf16>
    %130 = vector.shape_cast %129 : vector<1x128x32xbf16> to vector<128x32xbf16>
    %cst_40 = arith.constant dense<0.000000e+00> : vector<16x32xf32>
    %131 = tpu.matmul %128, %130, %cst_40 {dimension_numbers = #tpu.dot_dimension_numbers<[1], [0], [0], [1], [0, 0, 1, 1], [], []>} : vector<16x128xbf16>, vector<128x32xbf16>, vector<16x32xf32> -> vector<16x32xf32>
    %132 = vector.broadcast %13 : vector<1x32xf32> to vector<16x32xf32>
    %133 = arith.addf %131, %132 : vector<16x32xf32>
    %134 = arith.addf %86, %133 : vector<16x32xf32>
    %c1_i32 = arith.constant 1 : i32
    %135 = arith.cmpi slt, %arg1, %c1_i32 : i32
    %136 = arith.extui %135 : i1 to i32
    %c0_i32_41 = arith.constant 0 : i32
    %137 = arith.cmpi ne, %136, %c0_i32_41 : i32
    scf.if %137 {
      %c0_44 = arith.constant 0 : index
      %c0_45 = arith.constant 0 : index
      %141 = vector.load %arg10[%c0_44, %c0_45] : memref<16x32xf32, #tpu.memory_space<vmem>>, vector<16x32xf32>
      tpu.vector_store %arg10[%c0_44, %c0_45], %134 {strides = array<i32>} : memref<16x32xf32, #tpu.memory_space<vmem>>, vector<16x32xf32>,
    } else {
    }
    %c1_i32_42 = arith.constant 1 : i32
    %138 = arith.cmpi eq, %arg1, %c1_i32_42 : i32
    %139 = arith.extui %138 : i1 to i32
    %c0_i32_43 = arith.constant 0 : i32
    %140 = arith.cmpi ne, %139, %c0_i32_43 : i32
    scf.if %140 {
      %c0_44 = arith.constant 0 : index
      %c0_45 = arith.constant 0 : index
      %141 = vector.load %arg3[%c0_44, %c0_45] : memref<2x32xf32, #tpu.memory_space<vmem>>, vector<1x32xf32>
      %c1 = arith.constant 1 : index
      %c0_46 = arith.constant 0 : index
      %142 = vector.load %arg3[%c1, %c0_46] : memref<2x32xf32, #tpu.memory_space<vmem>>, vector<1x32xf32>
      %cst_47 = arith.constant dense<0.000000e+00> : vector<16xf32>
      %143 = vector.multi_reduction <add>, %134, %cst_47 [1] : vector<16x32xf32> to vector<16xf32>
      %144 = vector.shape_cast %143 : vector<16xf32> to vector<16x1xf32>
      %cst_48 = arith.constant 3.200000e+01 : f32
      %145 = vector.broadcast %cst_48 : f32 to vector<16x1xf32>
      %146 = arith.divf %144, %145 : vector<16x1xf32>
      %147 = vector.broadcast %146 : vector<16x1xf32> to vector<16x32xf32>
      %148 = arith.subf %134, %147 : vector<16x32xf32>
      %149 = arith.mulf %148, %148 : vector<16x32xf32>
      %cst_49 = arith.constant dense<0.000000e+00> : vector<16xf32>
      %150 = vector.multi_reduction <add>, %149, %cst_49 [1] : vector<16x32xf32> to vector<16xf32>
      %151 = vector.shape_cast %150 : vector<16xf32> to vector<16x1xf32>
      %cst_50 = arith.constant 3.200000e+01 : f32
      %152 = vector.broadcast %cst_50 : f32 to vector<16x1xf32>
      %153 = arith.divf %151, %152 : vector<16x1xf32>
      %154 = vector.broadcast %146 : vector<16x1xf32> to vector<16x32xf32>
      %155 = arith.subf %134, %154 : vector<16x32xf32>
      %cst_51 = arith.constant 9.99999974E-6 : f32
      %156 = vector.broadcast %cst_51 : f32 to vector<16x1xf32>
      %157 = arith.addf %153, %156 : vector<16x1xf32>
      %158 = math.rsqrt %157 : vector<16x1xf32>
      %159 = vector.broadcast %158 : vector<16x1xf32> to vector<16x32xf32>
      %160 = arith.mulf %155, %159 : vector<16x32xf32>
      %161 = vector.broadcast %141 : vector<1x32xf32> to vector<16x32xf32>
      %162 = arith.mulf %160, %161 : vector<16x32xf32>
      %163 = vector.broadcast %142 : vector<1x32xf32> to vector<16x32xf32>
      %164 = arith.addf %162, %163 : vector<16x32xf32>
      %c0_52 = arith.constant 0 : index
      %c0_53 = arith.constant 0 : index
      %165 = vector.load %arg10[%c0_52, %c0_53] : memref<16x32xf32, #tpu.memory_space<vmem>>, vector<16x32xf32>
      tpu.vector_store %arg10[%c0_52, %c0_53], %164 {strides = array<i32>} : memref<16x32xf32, #tpu.memory_space<vmem>>, vector<16x32xf32>,
    } else {
    }
    return
  }
  func.func @transform_0(%arg0: i32, %arg1: i32) -> (i32, i32) {
    %c0_i32 = arith.constant 0 : i32
    %c0_i32_0 = arith.constant 0 : i32
    %c0_i32_1 = arith.constant 0 : i32
    return %c0_i32, %c0_i32_0 : i32, i32
  }
  func.func @transform_1(%arg0: i32, %arg1: i32) -> (i32, i32) {
    %c0_i32 = arith.constant 0 : i32
    %c0_i32_0 = arith.constant 0 : i32
    %c0_i32_1 = arith.constant 0 : i32
    return %c0_i32, %c0_i32_0 : i32, i32
  }
  func.func @transform_2(%arg0: i32, %arg1: i32) -> (i32, i32) {
    %c0_i32 = arith.constant 0 : i32
    %c0_i32_0 = arith.constant 0 : i32
    return %arg0, %c0_i32 : i32, i32
  }
  func.func @transform_3(%arg0: i32, %arg1: i32) -> (i32, i32, i32) {
    %c0_i32 = arith.constant 0 : i32
    %c0_i32_0 = arith.constant 0 : i32
    %c0_i32_1 = arith.constant 0 : i32
    return %arg1, %c0_i32, %c0_i32_0 : i32, i32, i32
  }
  func.func @transform_4(%arg0: i32, %arg1: i32) -> (i32, i32, i32) {
    %c0_i32 = arith.constant 0 : i32
    %c0_i32_0 = arith.constant 0 : i32
    %c0_i32_1 = arith.constant 0 : i32
    return %arg1, %c0_i32, %c0_i32_0 : i32, i32, i32
  }
  func.func @transform_5(%arg0: i32, %arg1: i32) -> (i32, i32, i32) {
    %c0_i32 = arith.constant 0 : i32
    %c0_i32_0 = arith.constant 0 : i32
    %c0_i32_1 = arith.constant 0 : i32
    return %arg1, %c0_i32, %c0_i32_0 : i32, i32, i32
  }
  func.func @transform_6(%arg0: i32, %arg1: i32) -> (i32, i32, i32) {
    %c0_i32 = arith.constant 0 : i32
    %c0_i32_0 = arith.constant 0 : i32
    %c0_i32_1 = arith.constant 0 : i32
    return %arg1, %c0_i32, %c0_i32_0 : i32, i32, i32
  }
  func.func @transform_7(%arg0: i32, %arg1: i32) -> (i32, i32, i32) {
    %c0_i32 = arith.constant 0 : i32
    %c0_i32_0 = arith.constant 0 : i32
    %c0_i32_1 = arith.constant 0 : i32
    return %arg1, %c0_i32, %c0_i32_0 : i32, i32, i32
  }
  func.func @transform_8(%arg0: i32, %arg1: i32) -> (i32, i32) {
    %c0_i32 = arith.constant 0 : i32
    %c0_i32_0 = arith.constant 0 : i32
    return %arg0, %c0_i32 : i32, i32
  }
}

</mosaic_0001>

<bundles_post_ra>
// kernel: _lambda_.3
= control target key start
LH: loop header
LB: loop body
LE: loop exit
PB: predicated region body
PF: predicated region fallthrough
CT: control target
= control target key end

     0   :  { %7 = vsyncpa [#allocation3], 0  ;;  %s287_s0 = inlined_call_operand.hbm [shape: f32[16,32], index: 0, kind: input, shape index: {}]   ;;  %s288_s1 = inlined_call_operand.hbm [shape: bf16[32,256], index: 1, kind: input, shape index: {}]   ;;  %s289_s2 = inlined_call_operand.hbm [shape: f32[16,256], index: 2, kind: output, shape index: {}]  }
   0x1   :  { %8 = vsyncpa [#allocation6], 0 }
   0x2   :  { %9 = vsyncpa [#allocation4], 0  ;;  %s228_s9 = smov [#allocation2]   ;;  %s156_s13 = scalar_lea.hbm %s287_s0, 256 }
   0x3   :  { %s15_s10 = sshll.u32 %s228_s9, 4  ;;  %p157_p0 = scmp.ne.s32.totalorder %s287_s0, %s156_s13  ;;  %s16_s10 = int_to_ptr.vmem [resolvable:$true] %s15_s10 }
   0x4   :  { %p160_p1 = scmp.lt.u32.totalorder %s156_s13, %s287_s0 }
   0x6   :  { %p162_p2 = pnand %p160_p1, %p157_p0 }
   0x8   :  { %165 = shalt.err (!%p162_p2)
}
   0x9   :  { %s166_s18 = scalar_lea.vmem %s16_s10, 256  ;;  %p171_p4 = scmp.lt.s32.totalorder %s16_s10, %s16_s10 }
   0xa   :  { %p167_p3 = scmp.ne.s32.totalorder %s16_s10, %s166_s18  ;;  %p172_p5 = scmp.lt.s32.totalorder %s166_s18, %s166_s18 }
   0xc   :  { %p173_p6 = por %p172_p5, %p171_p4 }
   0xe   :  { %p174_p7 = pnand %p173_p6, %p167_p3 }
  0x10   :  { %177 = shalt.err (!%p174_p7)
}
  0x11   :  { %s229_s19 = smov 128   ;;  %s230_s20 = smov 8  }
  0x12   :  { %21 = dma.hbm_to_vmem [thread:$0]  %s287_s0, 256, %s16_s10, [#allocation3], %s229_s19, %s229_s19, %s230_s20  }
  0x13   :  { %s231_s23 = smov [#allocation5]   ;;  %s178_s27 = scalar_lea.hbm %s288_s1, 512 }
  0x14   :  { %s27_s24 = sshll.u32 %s231_s23, 4  ;;  %p179_p8 = scmp.ne.s32.totalorder %s288_s1, %s178_s27  ;;  %s28_s24 = int_to_ptr.vmem [resolvable:$true] %s27_s24 }
  0x15   :  { %p182_p9 = scmp.lt.u32.totalorder %s178_s27, %s288_s1 }
  0x17   :  { %p184_p10 = pnand %p182_p9, %p179_p8 }
  0x19   :  { %187 = shalt.err (!%p184_p10)
}
  0x1a   :  { %s188_s4 = scalar_lea.vmem %s28_s24, 512  ;;  %p193_p12 = scmp.lt.s32.totalorder %s28_s24, %s28_s24 }
  0x1b   :  { %p189_p11 = scmp.ne.s32.totalorder %s28_s24, %s188_s4  ;;  %p194_p13 = scmp.lt.s32.totalorder %s188_s4, %s188_s4 }
  0x1d   :  { %p195_p0 = por %p194_p13, %p193_p12 }
  0x1f   :  { %p196_p1 = pnand %p195_p0, %p189_p11 }
  0x21   :  { %199 = shalt.err (!%p196_p1)
}
  0x22   :  { %33 = dma.hbm_to_vmem [thread:$0]  %s288_s1, 512, %s28_s24, [#allocation6], %s229_s19, %s229_s19, %s230_s20  }
  0x23   :  { %222 = dma.done.wait [#allocation3], 256  }
  0x24   :  { %223 = vsyncadd [#allocation3], 4294967040 }
  0x25   :  { %224 = dma.done.wait [#allocation6], 512  }
  0x26   :  { %225 = vsyncadd [#allocation6], 4294966784  ;;  %v232_v0 = vmov 0   ;;  %v150_v1 = vld [vmem:[#allocation5 + $0x4] ss:$8 sps:$4 sm:$0xff]   ;;  %v41_v5 = vld [vmem:[#allocation2] sm:$0xff] }
  0x27   :  { %104 = vmatprep.mubr.bf16.mxu0 %v232_v0  ;;  %v152_v2 = vld [vmem:[#allocation5] ss:$8 sps:$4 sm:$0xff]   ;;  %72 = vmatprep.subr.bf16.mxu0 %v150_v1  ;;  %v153_v3 = vld [vmem:[#allocation5 + $0x14] ss:$8 sps:$4 sm:$0xff]   ;;  %v155_v4 = vld [vmem:[#allocation5 + $0x10] ss:$8 sps:$4 sm:$0xff]  }
  0x28   :  { %73 = vmatpush1.bf16.msra.mxu0 %v152_v2  ;;  %v42_v6 = vld [vmem:[#allocation2 + $0x8] sm:$0xff]  ;;  %vm68_vm0 = vcmask 261120   ;;  %s233_s1 = smov [#allocation7]  }
  0x29   :  { %74 = vmatprep.subr.bf16.mxu0 %v153_v3  ;;  %v43_v7 = vpack.c.bf16 %v42_v6, %v41_v5  ;;  %s124_s6 = sshll.u32 %s233_s1, 4  ;;  %s125_s6 = int_to_ptr.vmem [resolvable:$true] %s124_s6 }
  0x2a   :  { %s200_s7 = scalar_lea.vmem %s125_s6, 512  ;;  %p205_p3 = scmp.lt.s32.totalorder %s125_s6, %s125_s6 }
  0x2b   :  { %p201_p2 = scmp.ne.s32.totalorder %s125_s6, %s200_s7  ;;  %p206_p4 = scmp.lt.s32.totalorder %s200_s7, %s200_s7 }
  0x2c   :  { %75 = vmatpush1.bf16.msra.mxu0 %v155_v4 }
  0x2d   :  { %p207_p5 = por %p206_p4, %p205_p3 }
  0x2f   :  { %141 = vmatmul.mubr.msk.bf16.vlgmr.msra.gmra.mrb[0].mxu0 %vm68_vm0, %v43_v7  ;;  %p208_p6 = pnand %p207_p5, %p201_p2 }
 0x102   :  { %v106_v8 = vpop.f32.mrb[0].mxu0 }
 0x103   :  { %115 = vst [vmem:[#allocation7] sm:$0xff] %v106_v8  ;;  %v108_v9 = vpop.f32.mrb[1].mxu0 }
 0x104   :  { %116 = vst [vmem:[#allocation7 + $0x8] sm:$0xff] %v108_v9  ;;  %v110_v10 = vpop.f32.mrb[2].mxu0 }
 0x105   :  { %117 = vst [vmem:[#allocation7 + $0x10] sm:$0xff] %v110_v10  ;;  %v112_v11 = vpop.f32.mrb[3].mxu0 }
 0x106   :  { %118 = vst [vmem:[#allocation7 + $0x18] sm:$0xff] %v112_v11 }
 0x107   :  { %211 = shalt.err (!%p208_p6)
}
 0x108   :  { %s212_s10 = scalar_lea.hbm %s289_s2, 512 }
 0x109   :  { %p213_p7 = scmp.ne.s32.totalorder %s289_s2, %s212_s10  ;;  %p216_p8 = scmp.lt.u32.totalorder %s212_s10, %s289_s2 }
 0x10b   :  { %p218_p9 = pnand %p216_p8, %p213_p7 }
 0x10d   :  { %221 = shalt.err (!%p218_p9)
}
 0x10e   :  { %s234_s15 = smov 256   ;;  %s235_s16 = smov 16  }
 0x10f   :  { %130 = dma.vmem_to_hbm [thread:$0]  %s125_s6, 512, %s289_s2, [#allocation4], %s234_s15, %s234_s15, %s235_s16  }
 0x110   :  { %226 = dma.done.wait [#allocation4], 512  }
 0x111   :  { %227 = vsyncadd [#allocation4], 4294966784 }
 0x112   :  { %134 = vsyncpa [#allocation3], 1 }
 0x113   :  { %135 = vsyncpa [#allocation6], 1 }
 0x114   :  { %136 = vsyncpa [#allocation4], 1 }

// kernel: _lambda_.2
= control target key start
LH: loop header
LB: loop body
LE: loop exit
PB: predicated region body
PF: predicated region fallthrough
CT: control target
= control target key end

     0   :  { %s5034_s0 = inlined_call_operand.hbm [shape: f32[8,8], index: 0, kind: input, shape index: {}]   ;;  %s5035_s1 = inlined_call_operand.hbm [shape: f32[2,32], index: 1, kind: input, shape index: {}]   ;;  %s5036_s2 = inlined_call_operand.hbm [shape: f32[16,32], index: 2, kind: input, shape index: {}]   ;;  %s5037_s3 = inlined_call_operand.hbm [shape: f32[2,8,128], index: 3, kind: input, shape index: {}]   ;;  %s5038_s4 = inlined_call_operand.hbm [shape: bf16[2,32,96], index: 4, kind: input, shape index: {}]   ;;  %s5039_s5 = inlined_call_operand.hbm [shape: bf16[2,32,32], index: 5, kind: input, shape index: {}]   ;;  %s5040_s6 = inlined_call_operand.hbm [shape: bf16[2,32,128], index: 6, kind: input, shape index: {}]   ;;  %s5041_s7 = inlined_call_operand.hbm [shape: bf16[2,128,32], index: 7, kind: input, shape index: {}]   ;;  %s5042_s8 = inlined_call_operand.hbm [shape: f32[16,32], index: 8, kind: output, shape index: {}]  }
   0x1   :  { %5059 = sst [smem:[#allocation30_spill]] %s5035_s1 }
   0x2   :  { %5060 = sst [smem:[#allocation31_spill]] %s5037_s3 }
   0x3   :  { %5061 = sst [smem:[#allocation32_spill]] %s5039_s5 }
   0x4   :  { %5062 = sst [smem:[#allocation33_spill]] %s5042_s8 }
   0x5   :  { %13 = vsyncpa [#allocation3], 0 }
   0x6   :  { %14 = vsyncpa [#allocation6], 0 }
   0x7   :  { %15 = vsyncpa [#allocation9], 0 }
   0x8   :  { %17 = vsyncpa [#allocation9 + $0x1], 0 }
   0x9   :  { %18 = vsyncpa [#allocation12], 0 }
   0xa   :  { %20 = vsyncpa [#allocation12 + $0x1], 0 }
   0xb   :  { %21 = vsyncpa [#allocation15], 0 }
   0xc   :  { %23 = vsyncpa [#allocation15 + $0x1], 0 }
   0xd   :  { %24 = vsyncpa [#allocation4], 0  ;;  %s4149_s27 = smov 0   ;;  %s4151_s28 = smov 0  }
   0xe   :  { %s4153_s29 = smov 0   ;;  %s4155_s30 = smov 0  }
   0xf   :  { %s4157_s9 = smov 0   ;;  %s4159_s10 = smov 0  }
  0x10 LB: > { %5063 = sst [smem:[#allocation23_spill]] %s4060_s28  ;;  %s4178_s11 = sadd.s32 4294967295, %s4076_s10   ;;  %s4076_s10 = sphi %s4159_s10, %s30_s10   ;;  %s4072_s9 = sphi %s4157_s9, %s5104_s9   ;;  %s4068_s30 = sphi %s4155_s30, %s5103_s30   ;;  %s4064_s29 = sphi %s4153_s29, %s5101_s29   ;;  %s4060_s28 = sphi %s4151_s28, %s5100_s28   ;;  %s4056_s27 = sphi %s4149_s27, %s5099_s27  }
  0x11   : > { %5064 = sst [smem:[#allocation24_spill]] %s4064_s29  ;;  %p130_p0 = scmp.ne.s32.totalorder %s4060_s28, %s4056_s27 }
  0x12   : > { %5065 = sst [smem:[#allocation25_spill]] %s4068_s30  ;;  %p5043_p1 = scmp.eq.s32.totalorder %s4178_s11, 0 }
  0x13   : > { %5066 = sst [smem:[#allocation26_spill]] %s4076_s10  ;;  %p3256_p2 = scmp.ge.s32.totalorder %s4076_s10, 1 }
  0x14   : > { %p271_p3 = scmp.lt.s32.totalorder %s4076_s10, 3  ;;  %p4186_p4 = por %p5043_p1, %p130_p0 }
  0x15   : > { %s4078_s14 = smov [#allocation5]   ;;  %s39_s17 = sadd.s32 1, %s4072_s9 }
  0x16   : > { %s5067_s12 = scalar_select %p4186_p4, 1, 0 }
  0x17   : > { %p4190_p5 = pnand %p3256_p2, %p271_p3  ;;  %s295_s15 = sshll.u32 %s4078_s14, 4  ;;  %s296_s15 = int_to_ptr.vmem [resolvable:$true] %s295_s15 }
  0x18   : > { %5068 = sst [smem:[#allocation27_spill]] %s5067_s12  ;;  %s117_s18 = sadd.s32 1, %s4064_s29 }
  0x19   : > { %s5069_s13 = scalar_select %p4190_p5, 1, 0 }
  0x1a   : > { %p3562_p6 = pneg %p4190_p5  ;;  %p4204_p8 = scmp.ge.s32.totalorder %s39_s17, 2 }
  0x1b   : > { %s5072_s1 = sld [smem:[#allocation30_spill]] }
  0x1c   : > { %p4198_p7 = pnand %p3562_p6, %p5043_p1 }
  0x1d   : > { %s5071_s19 = scalar_select %p4204_p8, 1, 0 }
  0x1e   : > { %s5070_s16 = scalar_select %p4198_p7, 1, 0 }
  0x1f   : > { %p4216_p10 = pneg %p4198_p7 }
  0x21   : > { %s3746_s22 = scalar_lea.hbm %s5072_s1, 32 }
  0x22   : > { %p3747_p9 = scmp.ne.s32.totalorder %s5072_s1, %s3746_s22  ;;  %p3753_p13 = scmp.lt.u32.totalorder %s3746_s22, %s5072_s1 }
  0x23   : > { %s5073_s25 = scalar_select %p4216_p10, 1, 0 }
  0x24   : > { %p3749_p11 = pnand %p4216_p10, %p3747_p9 }
  0x26   : > { %p3750_p12 = pneg %p3749_p11 }
  0x28   : > { %p3755_p0 = pnand %p3753_p13, %p3750_p12 }
  0x2a   : > { %3758 = shalt.err (!%p3755_p0)
}
  0x2b   : > { %s3759_s14 = scalar_lea.vmem %s296_s15, 32  ;;  %p3767_p1 = scmp.lt.s32.totalorder %s296_s15, %s296_s15 }
  0x2c   : > { %p3760_p2 = scmp.ne.s32.totalorder %s296_s15, %s3759_s14  ;;  %p3768_p4 = scmp.lt.s32.totalorder %s3759_s14, %s3759_s14 }
  0x2e   : > { %p3762_p3 = pnand %p3760_p2, %p4216_p10  ;;  %p3769_p5 = por %p3768_p4, %p3767_p1 }
  0x30   : > { %p3763_p6 = pneg %p3762_p3 }
  0x32   : > { %p3770_p8 = pnand %p3769_p5, %p3763_p6 }
  0x34   : > { %3773 = shalt.err (!%p3770_p8)
}
  0x35   : > { %3568 = dma.hbm_to_vmem [thread:$0]  (!%p4198_p7), %s5072_s1, 32, %s296_s15, [#allocation6]  }
  0x36   : > { %p5074_p1 = scmp.ne.s32.totalorder %s5071_s19, 0  ;;  %p124_p4 = scmp.ne.s32.totalorder %s4064_s29, %s4060_s28 }
  0x37   : > { %p125_p5 = scmp.eq.s32.totalorder %s4076_s10, 0  ;;  %p3591_p8 = scmp.lt.s32.totalorder %s4076_s10, 2 }
  0x38   : > { %s5106_s17 = smov (%p5074_p1, %s39_s17), 0  ;;  %s4244_s24 = sand.u32 1, %s4064_s29  }
  0x39   : > { %5075 = sst [smem:[#allocation28_spill]] %s5106_s17  ;;  %s114_s22 = ssub.s32 %s4072_s9, %s5106_s17 }
  0x3a   : > { %p115_p9 = scmp.eq.s32.totalorder %s114_s22, 0  ;;  %p126_p11 = por %p125_p5, %p124_p4 }
  0x3b   : > { %s3261_s15 = sshll.u32 %s4244_s24, 3  ;;  %s3262_s19 = sshll.u32 %s4072_s9, 7 }
  0x3c   : > { %s4249_s26 = scalar_select %p115_p9, %s4064_s29, %s117_s18  }
  0x3d   : > { %s5077_s3 = sld [smem:[#allocation31_spill]]  ;;  %s326_s21 = scalar_lea.vmem [#allocation8], %s3261_s15 }
  0x3e   : > { %5076 = sst [smem:[#allocation29_spill]] %s4249_s26  ;;  %s333_s22 = sshll.u32 %s326_s21, 4  ;;  %s4258_s22 = int_to_ptr.vmem [resolvable:$true] %s333_s22 }
  0x3f   : > { %p4260_p12 = pnand %p3591_p8, %p126_p11  ;;  %s4265_s18 = sshll.u32 %s4244_s24, 4 }
  0x40   : > { %s4268_s1 = sshll.u32 %s4072_s9, 8  ;;  %s5079_s27 = sand.u32 1, %s4076_s10  }
  0x41   : > { %s5078_s23 = scalar_select %p4260_p12, 1, 0 }
  0x42   : > { %p4278_p0 = pneg %p4260_p12 }
  0x43   : > { %s4256_s20 = scalar_lea.hbm %s5077_s3, %s3262_s19  ;;  %s4272_s19 = scalar_lea.sflag [#allocation9], %s5079_s27 }
  0x44   : > { %s3774_s14 = scalar_lea.hbm %s4256_s20, 128  ;;  %s3779_s26 = scalar_lea.hbm %s5077_s3, 256 }
  0x45   : > { %p3775_p13 = scmp.ne.s32.totalorder %s4256_s20, %s3774_s14  ;;  %p3780_p6 = scmp.lt.u32.totalorder %s4256_s20, %s5077_s3 }
  0x46   : > { %p3781_p1 = scmp.lt.u32.totalorder %s3779_s26, %s3774_s14  ;;  %p3783_p5 = scmp.lt.u32.totalorder %s3774_s14, %s4256_s20 }
  0x47   : > { %p3777_p2 = pnand %p4278_p0, %p3775_p13 }
  0x48   : > { %p3782_p4 = por %p3781_p1, %p3780_p6 }
  0x49   : > { %p3778_p3 = pneg %p3777_p2 }
  0x4a   : > { %p3784_p8 = por %p3783_p5, %p3782_p4 }
  0x4c   : > { %p3785_p9 = pnand %p3784_p8, %p3778_p3 }
  0x4e   : > { %3788 = shalt.err (!%p3785_p9)
}
  0x4f   : > { %s3789_s27 = scalar_lea.vmem %s4258_s22, 128  ;;  %s4079_s17 = smov [#allocation8]  }
  0x50   : > { %p3790_p11 = scmp.ne.s32.totalorder %s4258_s22, %s3789_s27  ;;  %s3794_s21 = sshll.u32 %s4079_s17, 4  ;;  %s3795_s21 = int_to_ptr.vmem [resolvable:$false] %s3794_s21 }
  0x51   : > { %s3796_s8 = scalar_lea.vmem %s3795_s21, 256  ;;  %p3797_p7 = scmp.lt.s32.totalorder %s4258_s22, %s3795_s21 }
  0x52   : > { %p3792_p13 = pnand %p3790_p11, %p4278_p0  ;;  %p3798_p10 = scmp.lt.s32.totalorder %s3796_s8, %s3789_s27 }
  0x54   : > { %p3793_p2 = pneg %p3792_p13  ;;  %p3799_p6 = por %p3798_p10, %p3797_p7 }
  0x56   : > { %p3800_p1 = pnand %p3799_p6, %p3793_p2 }
  0x58   : > { %3803 = shalt.err (!%p3800_p1)
}
  0x59   : > { %3575 = dma.hbm_to_vmem [thread:$0]  (!%p4260_p12), %s4256_s20, 128, %s4258_s22, %s4272_s19  }
  0x5a   : > { %s5081_s5 = sld [smem:[#allocation32_spill]]  ;;  %s365_s27 = scalar_lea.vmem [#allocation11], %s4265_s18 }
  0x5b   : > { %s372_s17 = sshll.u32 %s365_s27, 4  ;;  %s5082_s21 = sand.u32 1, %s4076_s10   ;;  %s4309_s17 = int_to_ptr.vmem [resolvable:$true] %s372_s17 }
  0x5c   : > { %s4313_s8 = scalar_lea.sflag [#allocation12], %s5082_s21 }
  0x60   : > { %s4306_s14 = scalar_lea.hbm %s5081_s5, %s4268_s1  ;;  %s3809_s29 = scalar_lea.hbm %s5081_s5, 512 }
  0x61   : > { %s3804_s3 = scalar_lea.hbm %s4306_s14, 256  ;;  %p3810_p4 = scmp.lt.u32.totalorder %s4306_s14, %s5081_s5 }
  0x62   : > { %p3805_p7 = scmp.ne.s32.totalorder %s4306_s14, %s3804_s3  ;;  %p3811_p5 = scmp.lt.u32.totalorder %s3809_s29, %s3804_s3 }
  0x63   : > { %p3813_p9 = scmp.lt.u32.totalorder %s3804_s3, %s4306_s14 }
  0x64   : > { %p3807_p10 = pnand %p3805_p7, %p4278_p0  ;;  %p3812_p8 = por %p3811_p5, %p3810_p4 }
  0x66   : > { %p3808_p3 = pneg %p3807_p10  ;;  %p3814_p11 = por %p3813_p9, %p3812_p8 }
  0x68   : > { %p3815_p13 = pnand %p3814_p11, %p3808_p3 }
  0x6a   : > { %3818 = shalt.err (!%p3815_p13)
}
  0x6b   : > { %s3819_s27 = scalar_lea.vmem %s4309_s17, 256  ;;  %s4080_s21 = smov [#allocation11]  }
  0x6c   : > { %p3820_p2 = scmp.ne.s32.totalorder %s4309_s17, %s3819_s27  ;;  %s3824_s20 = sshll.u32 %s4080_s21, 4  ;;  %s3825_s20 = int_to_ptr.vmem [resolvable:$false] %s3824_s20 }
  0x6d   : > { %s3826_s30 = scalar_lea.vmem %s3825_s20, 512  ;;  %p3827_p7 = scmp.lt.s32.totalorder %s4309_s17, %s3825_s20 }
  0x6e   : > { %p3822_p6 = pnand %p3820_p2, %p4278_p0  ;;  %p3828_p10 = scmp.lt.s32.totalorder %s3826_s30, %s3819_s27 }
  0x70   : > { %p3823_p1 = pneg %p3822_p6  ;;  %p3829_p4 = por %p3828_p10, %p3827_p7 }
  0x72   : > { %p3830_p5 = pnand %p3829_p4, %p3823_p1 }
  0x74   : > { %3833 = shalt.err (!%p3830_p5)
}
  0x75   : > { %s4081_s3 = smov 64   ;;  %s4082_s22 = smov 4  }
  0x76   : > { %3581 = dma.hbm_to_vmem [thread:$0]  (!%p4260_p12), %s4306_s14, 256, %s4309_s17, %s4313_s8, %s4081_s3, %s4081_s3, %s4082_s22  }
  0x77   : > { %s4083_s29 = smov [#allocation2]   ;;  %s4084_s21 = smov [#allocation7]  }
  0x78   : > { %s284_s26 = sshll.u32 %s4083_s29, 4  ;;  %s308_s20 = sshll.u32 %s4084_s21, 4  ;;  %s285_s26 = int_to_ptr.vmem [resolvable:$true] %s284_s26  ;;  %s4340_s20 = int_to_ptr.vmem [resolvable:$true] %s308_s20 }
  0x79   : > { %s3834_s5 = scalar_lea.hbm %s5034_s0, 128  ;;  %p5083_p8 = scmp.ne.s32.totalorder %s5073_s25, 0 }
  0x7a   : > { %p3835_p3 = scmp.ne.s32.totalorder %s5034_s0, %s3834_s5  ;;  %p3841_p13 = scmp.lt.u32.totalorder %s3834_s5, %s5034_s0 }
  0x7c   : > { %p3837_p9 = pnand %p3835_p3, %p5083_p8 }
  0x7e   : > { %p3838_p11 = pneg %p3837_p9 }
  0x80   : > { %p3843_p2 = pnand %p3841_p13, %p3838_p11 }
  0x82   : > { %3846 = shalt.err (!%p3843_p2)
}
  0x83   : > { %s3847_s17 = scalar_lea.vmem %s285_s26, 128  ;;  %p3855_p10 = scmp.lt.s32.totalorder %s285_s26, %s285_s26 }
  0x84   : > { %p3848_p6 = scmp.ne.s32.totalorder %s285_s26, %s3847_s17  ;;  %p3856_p4 = scmp.lt.s32.totalorder %s3847_s17, %s3847_s17 }
  0x86   : > { %p3850_p1 = pnand %p3848_p6, %p5083_p8  ;;  %p3857_p5 = por %p3856_p4, %p3855_p10 }
  0x88   : > { %p3851_p7 = pneg %p3850_p1 }
  0x8a   : > { %p3858_p12 = pnand %p3857_p5, %p3851_p7 }
  0x8c   : > { %3861 = shalt.err (!%p3858_p12)
}
  0x8d   : > { %p5084_p3 = scmp.ne.s32.totalorder %s5070_s16, 0  ;;  %s3862_s29 = scalar_lea.hbm %s5036_s2, 256 }
  0x8e   : > { %p3863_p9 = scmp.ne.s32.totalorder %s5036_s2, %s3862_s29  ;;  %p3869_p12 = scmp.lt.u32.totalorder %s3862_s29, %s5036_s2 }
  0x8f   : > { %3565 = dma.hbm_to_vmem [thread:$0]  (!%p5084_p3), %s5034_s0, 128, %s285_s26, [#allocation3]  }
  0x90   : > { %p3865_p11 = pnand %p3863_p9, %p5083_p8 }
  0x92   : > { %p3866_p13 = pneg %p3865_p11 }
  0x94   : > { %p3871_p2 = pnand %p3869_p12, %p3866_p13 }
  0x96   : > { %3874 = shalt.err (!%p3871_p2)
}
  0x97   : > { %s3875_s26 = scalar_lea.vmem %s4340_s20, 256  ;;  %p3883_p10 = scmp.lt.s32.totalorder %s4340_s20, %s4340_s20 }
  0x98   : > { %p3876_p6 = scmp.ne.s32.totalorder %s4340_s20, %s3875_s26  ;;  %p3884_p4 = scmp.lt.s32.totalorder %s3875_s26, %s3875_s26 }
  0x9a   : > { %p3878_p1 = pnand %p3876_p6, %p5083_p8  ;;  %p3885_p5 = por %p3884_p4, %p3883_p10 }
  0x9c   : > { %p3879_p7 = pneg %p3878_p1 }
  0x9e   : > { %p3886_p9 = pnand %p3885_p5, %p3879_p7 }
  0xa0   : > { %3889 = shalt.err (!%p3886_p9)
}
  0xa1   : > { %s4085_s17 = smov 128   ;;  %s4086_s10 = smov 8  }
  0xa2   : > { %3571 = dma.hbm_to_vmem [thread:$0]  (!%p5084_p3), %s5036_s2, 256, %s4340_s20, [#allocation6], %s4085_s17, %s4085_s17, %s4086_s10  }
  0xa3   : > { %s4387_s29 = scalar_lea.hbm %s5038_s4, %s4268_s1  ;;  %s344_s21 = scalar_lea.vmem [#allocation10], %s4265_s18 }
  0xa4   : > { %s351_s27 = sshll.u32 %s344_s21, 4  ;;  %s4396_s16 = scalar_lea.hbm %s5040_s6, %s4268_s1  ;;  %s4390_s27 = int_to_ptr.vmem [resolvable:$true] %s351_s27 }
  0xa5   : > { %s3890_s26 = scalar_lea.hbm %s4387_s29, 256  ;;  %s3895_s10 = scalar_lea.hbm %s5038_s4, 512 }
  0xa6   : > { %p3891_p8 = scmp.ne.s32.totalorder %s4387_s29, %s3890_s26  ;;  %p3896_p13 = scmp.lt.u32.totalorder %s4387_s29, %s5038_s4 }
  0xa7   : > { %p3897_p12 = scmp.lt.u32.totalorder %s3895_s10, %s3890_s26  ;;  %p3899_p6 = scmp.lt.u32.totalorder %s3890_s26, %s4387_s29 }
  0xa8   : > { %p3893_p3 = pnand %p3891_p8, %p4278_p0 }
  0xa9   : > { %p3898_p2 = por %p3897_p12, %p3896_p13 }
  0xaa   : > { %p3894_p11 = pneg %p3893_p3 }
  0xab   : > { %p3900_p1 = por %p3899_p6, %p3898_p2 }
  0xad   : > { %p3901_p7 = pnand %p3900_p1, %p3894_p11 }
  0xaf   : > { %3904 = shalt.err (!%p3901_p7)
}
  0xb0   : > { %s3905_s1 = scalar_lea.vmem %s4390_s27, 256  ;;  %s4087_s25 = smov [#allocation10]  }
  0xb1   : > { %p3906_p10 = scmp.ne.s32.totalorder %s4390_s27, %s3905_s1  ;;  %s3910_s28 = sshll.u32 %s4087_s25, 4  ;;  %s3911_s28 = int_to_ptr.vmem [resolvable:$false] %s3910_s28 }
  0xb2   : > { %s3912_s21 = scalar_lea.vmem %s3911_s28, 512  ;;  %p3913_p9 = scmp.lt.s32.totalorder %s4390_s27, %s3911_s28 }
  0xb3   : > { %p3908_p4 = pnand %p3906_p10, %p4278_p0  ;;  %p3914_p8 = scmp.lt.s32.totalorder %s3912_s21, %s3905_s1 }
  0xb5   : > { %p3909_p5 = pneg %p3908_p4  ;;  %p3915_p3 = por %p3914_p8, %p3913_p9 }
  0xb7   : > { %p3916_p13 = pnand %p3915_p3, %p3909_p5 }
  0xb9   : > { %3919 = shalt.err (!%p3916_p13)
}
  0xba   : > { %p5085_p11 = scmp.ne.s32.totalorder %s5078_s23, 0  ;;  %s386_s30 = scalar_lea.vmem [#allocation13], %s4265_s18 }
  0xbb   : > { %s393_s14 = sshll.u32 %s386_s30, 4  ;;  %s3272_s26 = sshll.u32 %s4244_s24, 6  ;;  %s4424_s14 = int_to_ptr.vmem [resolvable:$true] %s393_s14 }
  0xbc   : > { %3578 = dma.hbm_to_vmem [thread:$0]  (!%p5085_p11), %s4387_s29, 256, %s4390_s27, %s4272_s19, %s4081_s3, %s4081_s3, %s4082_s22  }
  0xbd   : > { %s3920_s20 = scalar_lea.hbm %s4396_s16, 256  ;;  %s3925_s12 = scalar_lea.hbm %s5040_s6, 512 }
  0xbe   : > { %p3921_p12 = scmp.ne.s32.totalorder %s4396_s16, %s3920_s20  ;;  %p3926_p1 = scmp.lt.u32.totalorder %s4396_s16, %s5040_s6 }
  0xbf   : > { %p3927_p7 = scmp.lt.u32.totalorder %s3925_s12, %s3920_s20  ;;  %p3929_p4 = scmp.lt.u32.totalorder %s3920_s20, %s4396_s16 }
  0xc0   : > { %p3923_p2 = pnand %p3921_p12, %p4278_p0 }
  0xc1   : > { %p3928_p10 = por %p3927_p7, %p3926_p1 }
  0xc2   : > { %p3924_p6 = pneg %p3923_p2 }
  0xc3   : > { %p3930_p5 = por %p3929_p4, %p3928_p10 }
  0xc5   : > { %p3931_p9 = pnand %p3930_p5, %p3924_p6 }
  0xc7   : > { %3934 = shalt.err (!%p3931_p9)
}
  0xc8   : > { %s3935_s18 = scalar_lea.vmem %s4424_s14, 256  ;;  %s4088_s19 = smov [#allocation13]  }
  0xc9   : > { %p3936_p8 = scmp.ne.s32.totalorder %s4424_s14, %s3935_s18  ;;  %s3940_s29 = sshll.u32 %s4088_s19, 4  ;;  %s3941_s29 = int_to_ptr.vmem [resolvable:$false] %s3940_s29 }
  0xca   : > { %s3942_s27 = scalar_lea.vmem %s3941_s29, 512  ;;  %p3943_p12 = scmp.lt.s32.totalorder %s4424_s14, %s3941_s29 }
  0xcb   : > { %p3938_p3 = pnand %p3936_p8, %p4278_p0  ;;  %p3944_p2 = scmp.lt.s32.totalorder %s3942_s27, %s3935_s18 }
  0xcd   : > { %p3939_p13 = pneg %p3938_p3  ;;  %p3945_p1 = por %p3944_p2, %p3943_p12 }
  0xcf   : > { %p3946_p7 = pnand %p3945_p1, %p3939_p13 }
  0xd1   : > { %3949 = shalt.err (!%p3946_p7)
}
  0xd2   : > { %3584 = dma.hbm_to_vmem [thread:$0]  (!%p5085_p11), %s4396_s16, 256, %s4424_s14, %s4313_s8, %s4081_s3, %s4081_s3, %s4082_s22  }
  0xd3   : > { %s3345_s25 = sshll.u32 %s4072_s9, 10  ;;  %s407_s20 = scalar_lea.vmem [#allocation14], %s3272_s26 }
  0xd4   : > { %s4456_s30 = scalar_lea.hbm %s5041_s7, %s3345_s25  ;;  %s414_s17 = sshll.u32 %s407_s20, 4  ;;  %s4460_s17 = int_to_ptr.vmem [resolvable:$true] %s414_s17 }
  0xd5   : > { %s404_s10 = scalar_lea.sflag [#allocation15], %s4244_s24  ;;  %s3950_s12 = scalar_lea.hbm %s4456_s30, 1024 }
  0xd6   : > { %p3951_p6 = scmp.ne.s32.totalorder %s4456_s30, %s3950_s12  ;;  %s3955_s14 = scalar_lea.hbm %s5041_s7, 2048 }
  0xd7   : > { %p3956_p5 = scmp.lt.u32.totalorder %s4456_s30, %s5041_s7  ;;  %p3957_p9 = scmp.lt.u32.totalorder %s3955_s14, %s3950_s12 }
  0xd8   : > { %p3953_p10 = pnand %p3951_p6, %p4278_p0  ;;  %p3959_p3 = scmp.lt.u32.totalorder %s3950_s12, %s4456_s30 }
  0xd9   : > { %p3958_p8 = por %p3957_p9, %p3956_p5 }
  0xda   : > { %p3954_p4 = pneg %p3953_p10 }
  0xdb   : > { %p3960_p13 = por %p3959_p3, %p3958_p8 }
  0xdd   : > { %p3961_p12 = pnand %p3960_p13, %p3954_p4 }
  0xdf   : > { %3964 = shalt.err (!%p3961_p12)
}
  0xe0   : > { %s3965_s26 = scalar_lea.vmem %s4460_s17, 1024  ;;  %s4089_s18 = smov [#allocation14]  }
  0xe1   : > { %p3966_p2 = scmp.ne.s32.totalorder %s4460_s17, %s3965_s26  ;;  %s3970_s19 = sshll.u32 %s4089_s18, 4  ;;  %s3971_s19 = int_to_ptr.vmem [resolvable:$false] %s3970_s19 }
  0xe2   : > { %s3972_s29 = scalar_lea.vmem %s3971_s19, 2048  ;;  %p3973_p6 = scmp.lt.s32.totalorder %s4460_s17, %s3971_s19 }
  0xe3   : > { %p3968_p1 = pnand %p3966_p2, %p4278_p0  ;;  %p3974_p10 = scmp.lt.s32.totalorder %s3972_s29, %s3965_s26 }
  0xe5   : > { %p3969_p7 = pneg %p3968_p1  ;;  %p3975_p5 = por %p3974_p10, %p3973_p6 }
  0xe7   : > { %p3976_p9 = pnand %p3975_p5, %p3969_p7 }
  0xe9   : > { %3979 = shalt.err (!%p3976_p9)
}
  0xea   : > { %3587 = dma.hbm_to_vmem [thread:$0]  (!%p5085_p11), %s4456_s30, 1024, %s4460_s17, %s404_s10, %s4081_s3, %s4081_s3, %s4082_s22  }
  0xeb   : > { %p5086_p0 = scmp.ne.s32.totalorder %s5069_s13, 0 }
  0xec   : > { %p5087_p4 = scmp.eq.s32.totalorder (!%p5086_p0), %s4178_s11, 0 }
  0xed   : > { %426 = sbr.rel (%p5086_p0) target bundleno = 3435 (0xd6b), region = 52 }
  0xf4   : > { %4031 = dma.done.wait (%p5087_p4), [#allocation3], 128   ;;  %p5088_p8 = pmov %p5087_p4 }
  0xf5   : > { %p5089_p3 = pmov %p5087_p4 }
  0xf6   : > { %4033 = vsyncadd (%p5088_p8), [#allocation3], 4294967168 }
  0xf7   : > { %4035 = dma.done.wait (%p5089_p3), [#allocation6], 288   ;;  %p5090_p13 = pmov %p5089_p3 }
  0xf8   : > { %s5091_s23 = sld [smem:[#allocation23_spill]]  ;;  %s5092_s24 = sld [smem:[#allocation27_spill]] }
  0xf9   : > { %4037 = vsyncadd (%p5090_p13), [#allocation6], 4294967008  ;;  %s440_s15 = sand.u32 1, %s4178_s11  }
  0xfa   : > { %s441_s13 = scalar_lea.sflag [#allocation9], %s440_s15 }
  0xfe   : > { %s442_s3 = sand.u32 1, %s5091_s23   ;;  %p5093_p11 = scmp.ne.s32.totalorder %s5092_s24, 0 }
  0xff   : > { %s3279_s22 = sshll.u32 %s442_s3, 3 }
 0x100   : > { %s4501_s27 = scalar_lea.vmem [#allocation8], %s3279_s22 }
 0x101   : > { %4039 = dma.done.wait (%p5093_p11), %s441_s13, 384  }
 0x102   : > { %4041 = vsyncadd (%p5093_p11), %s441_s13, 4294966912  ;;  %s4507_s25 = sshll.u32 %s442_s3, 4  ;;  %s459_s21 = scalar_lea.sflag [#allocation12], %s440_s15 }
 0x103   : > { %s453_s28 = scalar_lea.vmem [#allocation10], %s4507_s25  ;;  %s462_s30 = scalar_lea.vmem [#allocation11], %s4507_s25 }
 0x104   : > { %4043 = dma.done.wait (%p5093_p11), %s459_s21, 512  }
 0x105   : > { %4045 = vsyncadd (%p5093_p11), %s459_s21, 4294966784  ;;  %s3283_s20 = sshll.u32 %s442_s3, 6  ;;  %s471_s17 = scalar_lea.vmem [#allocation13], %s4507_s25 }
 0x106   : > { %s477_s10 = scalar_lea.sflag [#allocation15], %s442_s3  ;;  %s4516_s12 = scalar_lea.vmem [#allocation14], %s3283_s20 }
 0x107   : > { %4047 = dma.done.wait (%p5093_p11), %s477_s10, 1024  }
 0x108   : > { %4049 = vsyncadd (%p5093_p11), %s477_s10, 4294966272  ;;  %s5094_s8 = sld [smem:[#allocation25_spill]] }
 0x10e   : > { %p3284_p12 = scmp.ne.s32.totalorder %s5094_s8, 0 }
 0x10f   : > { %v535_v0 = vld [vmem:[#allocation7] sm:$0xff] (!%p3284_p12)  ;;  %vm537_vm0 = vcmask (!%p3284_p12), 261120   ;;  %v536_v1 = vld [vmem:[#allocation7 + $0x8] sm:$0xff] (!%p3284_p12) }
 0x110   : > { %534 = sbr.rel (%p3284_p12) target bundleno = 279 (0x117), region = 88  ;;  %538 = vst.msk [vmem:[#allocation16] sm:$0xff] (!%p3284_p12), %vm537_vm0, %v535_v0  ;;  %539 = vst.msk [vmem:[#allocation16 + $0x8] sm:$0xff] (!%p3284_p12), %vm537_vm0, %v536_v1 }
 0x117 PF: > { %v540_v2 = vld [vmem:[#allocation16] sm:$0xff]  ;;  %vm543_vm1 = vcmask 261120   ;;  %v541_v3 = vld [vmem:[#allocation16 + $0x8] sm:$0xff]  ;;  %v4090_v17 = vmov 0.0   ;;  %vm4091_vm2 = vmmov 0   ;;  %v571_v23 = vlaneseq  ;;  %v542_v28 = vld [vmem:[%s4501_s27] sm:$0xff] }
 0x118   : > { %v544_v4 = vsel %vm543_vm1, %v540_v2, 0.0  ;;  %v547_v5 = vsel %vm543_vm1, %v541_v3, 0.0  ;;  %v3681_v16 = vld [vmem:[%s453_s28] sm:$0xff]   ;;  %3396 = vmatprep.subr.bf16.mxu0 %v4090_v17  ;;  %3416 = vmatprep.subr.bf16.mxu1 %v4090_v17  ;;  %v3682_v18 = vld [vmem:[%s453_s28 + $0x8] sm:$0xff]   ;;  %s4092_s16 = smov 112   ;;  %s4093_s14 = smov 120  }
 0x119   : > { %545 = vadd.xlane.f32.xlu0 %v544_v4  ;;  %3397 = vmatpush3.bf16.msra.mxu0 %v3681_v16  ;;  %v4539_v26 = vshrl.u32 %v571_v23, 7  ;;  %s4094_s5 = smov 104   ;;  %s4095_s1 = smov 96   ;;  %v4096_v55 = vmov 1983009808   ;;  %vm1556_vm3 = vcmask 64512  }
 0x11a   : > { %3400 = vmatprep.mubr.msk.bf16.mxu0 %vm4091_vm2, %v4090_v17  ;;  %3398 = vmatprep.subr.bf16.mxu0 %v4090_v17  ;;  %v671_v56 = vunpack.c.l.s4 %v4096_v55  ;;  %v4097_v58 = vmov 1934713408   ;;  %s4098_s26 = smov 64   ;;  %vm2041_vm4 = vcmask 1043456   ;;  %s4099_s18 = smov 16   ;;  %vm2705_vm5 = vcmask 130048  }
 0x11b   : > { %3418 = vmatprep.mubr.msk.bf16.mxu1 %vm4091_vm2, %v4090_v17  ;;  %v573_v27 = vsub.s32 0, %v4539_v26  ;;  %v579_v32 = vsub.s32 1, %v4539_v26  ;;  %v590_v41 = vsub.s32 4, %v4539_v26  ;;  %v703_v59 = vunpack.c.l.s4 %v4097_v58  ;;  %s4100_s19 = smov 8   ;;  %s4101_s29 = smov 24  }
 0x11c   : > { %v672_v57 = vunpack.c.0.s8 %v671_v56  ;;  %vm2708_vm6 = vcmask 195584   ;;  %s5095_s23 = sld [smem:[#allocation25_spill]] }
 0x11d   : > { %548 = vadd.xlane.f32.xlu0 %v547_v5  ;;  %3399 = vmatpush3.bf16.msra.mxu0 %v3682_v18  ;;  %v574_v31 = vrot.slane %v542_v28, %v573_v27  ;;  %v580_v36 = vrot.slane %v542_v28, %v579_v32  ;;  %v591_v42 = vrot.slane %v542_v28, %v590_v41  ;;  %v704_v1 = vunpack.c.0.s8 %v703_v59 }
 0x11e   : > { %3404 = vmatprep.subr.bf16.mxu0 %v4090_v17  ;;  %v4583_v62 = vsub.s32 %v672_v57, %v4539_v26 }
 0x122   : > { %p3334_p2 = scmp.ge.s32.totalorder %s5095_s23, 1 }
 0x1a6   : > { %v546_v6 = vpop.xlane.xlu0 %545 }
 0x1a7   : > { %v551_v7 = vmul.f32 0.03125, %v546_v6  ;;  %v4594_v6 = vsub.s32 %v704_v1, %v4539_v26 }
 0x1a9   : > { %v553_v8 = vsub.f32 %v540_v2, %v551_v7 }
 0x1aa   : > { %v549_v9 = vpop.xlane.xlu0 %548 }
 0x1ab   : > { %v552_v10 = vmul.f32 0.03125, %v549_v9  ;;  %v555_v11 = vmul.f32 %v553_v8, %v553_v8 }
 0x1ad   : > { %v554_v12 = vsub.f32 %v541_v3, %v552_v10  ;;  %v557_v13 = vsel %vm543_vm1, %v555_v11, 0.0 }
 0x1ae   : > { %558 = vadd.xlane.f32.xlu1 %v557_v13 }
 0x1af   : > { %v556_v14 = vmul.f32 %v554_v12, %v554_v12 }
 0x1b1   : > { %v560_v15 = vsel %vm543_vm1, %v556_v14, 0.0 }
 0x1b2   : > { %561 = vadd.xlane.f32.xlu1 %v560_v15 }
 0x23b   : > { %v559_v19 = vpop.xlane.xlu1 %558 }
 0x23c   : > { %v563_v20 = vmul.f32 0.03125, %v559_v19 }
 0x23e   : > { %v565_v21 = vadd.f32 1e-05, %v563_v20 }
 0x23f   : > { %v562_v22 = vpop.xlane.xlu1 %561 }
 0x240   : > { %3695 = vrsqrt.f32 %v565_v21  ;;  %v564_v24 = vmul.f32 0.03125, %v562_v22 }
 0x242   : > { %v566_v25 = vadd.f32 1e-05, %v564_v24 }
 0x244   : > { %3697 = vrsqrt.f32 %v566_v25 }
 0x24a   : > { %v3696_v29 = vpop.eup %3695 }
 0x24b   : > { %v569_v30 = vmul.f32 %v3696_v29, %v553_v8 }
 0x24d   : > { %v575_v35 = vmul.f32 %v574_v31, %v569_v30 }
 0x24e   : > { %v3698_v33 = vpop.eup %3697 }
 0x24f   : > { %v570_v34 = vmul.f32 %v3698_v33, %v554_v12  ;;  %v581_v38 = vadd.f32 %v580_v36, %v575_v35 }
 0x251   : > { %v576_v37 = vmul.f32 %v574_v31, %v570_v34 }
 0x253   : > { %v582_v39 = vadd.f32 %v580_v36, %v576_v37 }
 0x255   : > { %v583_v40 = vpack.c.bf16 %v582_v39, %v581_v38 }
 0x257   : > { %3401 = vmatmul.mubr.msk.bf16.vlgmr.msra.gmra.mrb[0].mxu0 %vm543_vm1, %v583_v40 }
 0x258   : > { %3406 = vmatprep.mubr.msk.bf16.mxu0 %vm4091_vm2, %v4090_v17 }
 0x32a   : > { %v641_v43 = vpop.f32.mrb[0].mxu0 }
 0x32b   : > { %v4548_v44 = vadd.f32 %v641_v43, %v591_v42  ;;  %v3402_v45 = vpop.f32.mrb[1].mxu0 }
 0x32c   : > { %v644_v46 = vpop.f32.mrb[2].mxu0 }
 0x32d   : > { %656 = vrot.lane.b32.xlu1 %v4548_v44, %s4092_s16  ;;  %650 = vrot.lane.b32.xlu0 %v4548_v44, %s4093_s14  ;;  %v3403_v47 = vpop.f32.mrb[3].mxu0  ;;  %v4552_v48 = vadd.f32 %v644_v46, %v591_v42 }
 0x331   : > { %662 = vrot.lane.b32.xlu1 %v4548_v44, %s4094_s5  ;;  %658 = vrot.lane.b32.xlu0 %v4552_v48, %s4092_s16 }
 0x335   : > { %948 = vrot.lane.b32.xlu0 %v4548_v44, %s4095_s1  ;;  %652 = vrot.lane.b32.xlu1 %v4552_v48, %s4093_s14 }
 0x339   : > { %664 = vrot.lane.b32.xlu1 %v4552_v48, %s4094_s5 }
 0x39f   : > { %v4559_v49 = vpop.permute.xlu1 %656  ;;  %v4561_v50 = vpop.permute.xlu0 %650 }
 0x3a0   : > { %952 = vrot.lane.b32.xlu0 %v4559_v49, %s4095_s1  ;;  %950 = vrot.lane.b32.xlu1 %v4561_v50, %s4095_s1  ;;  %v668_v63 = vcombine.low %v4548_v44, %v4559_v49  ;;  %v669_v0 = vcombine.high %v4548_v44, %v4559_v49 }
 0x3a2   : > { %v676_v4 = vrot.slane %v668_v63, %v4583_v62  ;;  %v683_v5 = vrot.slane %v669_v0, %v4583_v62 }
 0x3a3   : > { %v4565_v51 = vpop.permute.xlu1 %662  ;;  %v4569_v52 = vpop.permute.xlu0 %658 }
 0x3a4   : > { %956 = vrot.lane.b32.xlu0 %v4552_v48, %s4095_s1  ;;  %954 = vrot.lane.b32.xlu1 %v4565_v51, %s4095_s1  ;;  %v684_v60 = vcombine.low %v4561_v50, %v4565_v51  ;;  %v685_v61 = vcombine.high %v4561_v50, %v4565_v51  ;;  %v736_v22 = vcombine.low %v4552_v48, %v4569_v52 }
 0x3a5   : > { %v737_v25 = vcombine.high %v4552_v48, %v4569_v52 }
 0x3a6   : > { %v692_v2 = vrot.slane %v684_v60, %v4583_v62  ;;  %v699_v3 = vrot.slane %v685_v61, %v4583_v62  ;;  %v744_v33 = vrot.slane %v736_v22, %v4583_v62 }
 0x3a7   : > { %v4571_v53 = vpop.permute.xlu1 %652  ;;  %v949_v16 = vpop.permute.xlu0 %948  ;;  %v751_v35 = vrot.slane %v737_v25, %v4583_v62 }
 0x3a8   : > { %960 = vrot.lane.b32.xlu0 %v4569_v52, %s4095_s1  ;;  %958 = vrot.lane.b32.xlu1 %v4571_v53, %s4095_s1  ;;  %v700_v7 = vcombine.low %v676_v4, %v692_v2  ;;  %v701_v8 = vcombine.high %v676_v4, %v692_v2  ;;  %v716_v9 = vcombine.low %v683_v5, %v699_v3 }
 0x3a9   : > { %v717_v10 = vcombine.high %v683_v5, %v699_v3 }
 0x3aa   : > { %v708_v11 = vrot.slane %v700_v7, %v4594_v6  ;;  %v715_v12 = vrot.slane %v701_v8, %v4594_v6  ;;  %v724_v13 = vrot.slane %v716_v9, %v4594_v6 }
 0x3ab   : > { %v4575_v54 = vpop.permute.xlu1 %664  ;;  %v731_v14 = vrot.slane %v717_v10, %v4594_v6 }
 0x3ac   : > { %962 = vrot.lane.b32.xlu1 %v4575_v54, %s4095_s1  ;;  %v804_v15 = vcombine.low %v708_v11, %v715_v12  ;;  %v3288_v18 = vcombine.high %v708_v11, %v715_v12  ;;  %v752_v21 = vcombine.low %v4571_v53, %v4575_v54  ;;  %v753_v23 = vcombine.high %v4571_v53, %v4575_v54 }
 0x3ad   : > { %v820_v19 = vcombine.low %v724_v13, %v731_v14  ;;  %v3289_v20 = vcombine.high %v724_v13, %v731_v14 }
 0x3ae   : > { %v811_v24 = vrot.slane %v804_v15, %v4583_v62  ;;  %v819_v29 = vrot.slane %v3288_v18, %v4583_v62  ;;  %v760_v32 = vrot.slane %v752_v21, %v4583_v62  ;;  %v767_v34 = vrot.slane %v753_v23, %v4583_v62 }
 0x3af   : > { %v827_v30 = vrot.slane %v820_v19, %v4583_v62  ;;  %v835_v31 = vrot.slane %v3289_v20, %v4583_v62 }
 0x3b0   : > { %v768_v39 = vcombine.low %v744_v33, %v760_v32  ;;  %v769_v40 = vcombine.high %v744_v33, %v760_v32  ;;  %v836_v42 = vcombine.low %v811_v24, %v819_v29  ;;  %v784_v47 = vcombine.low %v751_v35, %v767_v34 }
 0x3b1   : > { %v852_v43 = vcombine.low %v827_v30, %v835_v31  ;;  %v785_v55 = vcombine.high %v751_v35, %v767_v34  ;;  %v837_v56 = vcombine.high %v811_v24, %v819_v29  ;;  %v853_v57 = vcombine.high %v827_v30, %v835_v31 }
 0x3b2   : > { %v776_v63 = vrot.slane %v768_v39, %v4594_v6  ;;  %v783_v0 = vrot.slane %v769_v40, %v4594_v6  ;;  %v4623_v2 = vrot.slane %v836_v42, %v4594_v6  ;;  %v792_v10 = vrot.slane %v784_v47, %v4594_v6 }
 0x3b3   : > { %v4626_v3 = vrot.slane %v852_v43, %v4594_v6  ;;  %v799_v11 = vrot.slane %v785_v55, %v4594_v6  ;;  %v4631_v12 = vrot.slane %v837_v56, %v4594_v6  ;;  %v4634_v13 = vrot.slane %v853_v57, %v4594_v6 }
 0x3b4   : > { %v872_v19 = vcombine.low %v776_v63, %v783_v0  ;;  %v3290_v20 = vcombine.high %v776_v63, %v783_v0 }
 0x3b5   : > { %v888_v29 = vcombine.low %v792_v10, %v799_v11  ;;  %v3291_v30 = vcombine.high %v792_v10, %v799_v11 }
 0x412   : > { %v953_v27 = vpop.permute.xlu0 %952  ;;  %v951_v28 = vpop.permute.xlu1 %950 }
 0x413   : > { %v972_v36 = vcombine.low %v949_v16, %v953_v27  ;;  %v973_v37 = vcombine.high %v949_v16, %v953_v27 }
 0x415   : > { %v980_v58 = vrot.slane %v972_v36, %v4583_v62  ;;  %v987_v59 = vrot.slane %v973_v37, %v4583_v62 }
 0x416   : > { %v957_v38 = vpop.permute.xlu0 %956  ;;  %v955_v41 = vpop.permute.xlu1 %954 }
 0x417   : > { %v988_v45 = vcombine.low %v951_v28, %v955_v41  ;;  %v989_v46 = vcombine.high %v951_v28, %v955_v41 }
 0x419   : > { %v996_v60 = vrot.slane %v988_v45, %v4583_v62  ;;  %v1003_v61 = vrot.slane %v989_v46, %v4583_v62 }
 0x41a   : > { %v959_v1 = vpop.permute.xlu1 %958  ;;  %v961_v9 = vpop.permute.xlu0 %960 }
 0x41b   : > { %v1004_v4 = vcombine.low %v980_v58, %v996_v60  ;;  %v1005_v5 = vcombine.high %v980_v58, %v996_v60  ;;  %v1020_v7 = vcombine.low %v987_v59, %v1003_v61  ;;  %v1021_v8 = vcombine.high %v987_v59, %v1003_v61 }
 0x41c   : > { %v1040_v21 = vcombine.low %v957_v38, %v961_v9  ;;  %v1041_v22 = vcombine.high %v957_v38, %v961_v9 }
 0x41d   : > { %v1012_v14 = vrot.slane %v1004_v4, %v4594_v6  ;;  %v1019_v15 = vrot.slane %v1005_v5, %v4594_v6  ;;  %v1028_v16 = vrot.slane %v1020_v7, %v4594_v6  ;;  %v1035_v18 = vrot.slane %v1021_v8, %v4594_v6 }
 0x41e   : > { %v963_v23 = vpop.permute.xlu1 %962  ;;  %v1048_v37 = vrot.slane %v1040_v21, %v4583_v62  ;;  %v1055_v38 = vrot.slane %v1041_v22, %v4583_v62  ;;  %v4657_v4 = vrot.slane %v872_v19, %v4583_v62  ;;  %v887_v5 = vrot.slane %v3290_v20, %v4583_v62 }
 0x41f   : > { %v1108_v24 = vcombine.low %v1012_v14, %v1019_v15  ;;  %v3292_v25 = vcombine.high %v1012_v14, %v1019_v15  ;;  %v1124_v27 = vcombine.low %v1028_v16, %v1035_v18  ;;  %v3293_v28 = vcombine.high %v1028_v16, %v1035_v18 }
 0x420   : > { %v1056_v31 = vcombine.low %v959_v1, %v963_v23  ;;  %v1057_v32 = vcombine.high %v959_v1, %v963_v23  ;;  %v895_v15 = vrot.slane %v888_v29, %v4583_v62  ;;  %v903_v16 = vrot.slane %v3291_v30, %v4583_v62 }
 0x421   : > { %v1115_v33 = vrot.slane %v1108_v24, %v4583_v62  ;;  %v1123_v34 = vrot.slane %v3292_v25, %v4583_v62  ;;  %v1131_v35 = vrot.slane %v1124_v27, %v4583_v62  ;;  %v1139_v36 = vrot.slane %v3293_v28, %v4583_v62 }
 0x422   : > { %v1064_v39 = vrot.slane %v1056_v31, %v4583_v62  ;;  %v1071_v40 = vrot.slane %v1057_v32, %v4583_v62  ;;  %v868_v31 = vcombine.low %v4623_v2, %v4626_v3  ;;  %v870_v32 = vcombine.low %v4631_v12, %v4634_v13 }
 0x423   : > { %v1140_v41 = vcombine.low %v1115_v33, %v1123_v34  ;;  %v1156_v42 = vcombine.low %v1131_v35, %v1139_v36  ;;  %v1141_v43 = vcombine.high %v1115_v33, %v1123_v34  ;;  %v1157_v45 = vcombine.high %v1131_v35, %v1139_v36 }
 0x424   : > { %v1072_v46 = vcombine.low %v1048_v37, %v1064_v39  ;;  %v1073_v47 = vcombine.high %v1048_v37, %v1064_v39  ;;  %v1088_v55 = vcombine.low %v1055_v38, %v1071_v40  ;;  %v1089_v56 = vcombine.high %v1055_v38, %v1071_v40 }
 0x425   : > { %v1148_v57 = vrot.slane %v1140_v41, %v4594_v6  ;;  %v1164_v58 = vrot.slane %v1156_v42, %v4594_v6  ;;  %v1155_v59 = vrot.slane %v1141_v43, %v4594_v6  ;;  %v1171_v60 = vrot.slane %v1157_v45, %v4594_v6 }
 0x426   : > { %v1080_v61 = vrot.slane %v1072_v46, %v4594_v6  ;;  %v1087_v63 = vrot.slane %v1073_v47, %v4594_v6  ;;  %v1096_v0 = vrot.slane %v1088_v55, %v4594_v6  ;;  %v1103_v1 = vrot.slane %v1089_v56, %v4594_v6 }
 0x427   : > { %v1172_v7 = vcombine.low %v1148_v57, %v1164_v58  ;;  %v1174_v8 = vcombine.low %v1155_v59, %v1171_v60  ;;  %v1173_v27 = vcombine.high %v1148_v57, %v1164_v58  ;;  %v904_v36 = vcombine.low %v4657_v4, %v887_v5 }
 0x428   : > { %v1176_v9 = vcombine.low %v1080_v61, %v1087_v63  ;;  %v3294_v10 = vcombine.high %v1080_v61, %v1087_v63  ;;  %v1192_v11 = vcombine.low %v1096_v0, %v1103_v1  ;;  %v3295_v14 = vcombine.high %v1096_v0, %v1103_v1 }
 0x429   : > { %v1244_v18 = vpack.c.bf16 %v1172_v7, %v1172_v7  ;;  %v1246_v21 = vpack.c.bf16 %v1174_v8, %v1174_v8  ;;  %v920_v37 = vcombine.low %v895_v15, %v903_v16  ;;  %v1245_v38 = vpack.c.bf16 %v1173_v27, %v1173_v27  ;;  %v1933_v27 = vld [vmem:[#allocation2] sm:$0xff] }
 0x42a   : > { %v1183_v22 = vrot.slane %v1176_v9, %v4583_v62  ;;  %v1191_v23 = vrot.slane %v3294_v10, %v4583_v62  ;;  %v1199_v19 = vrot.slane %v1192_v11, %v4583_v62  ;;  %v1207_v20 = vrot.slane %v3295_v14, %v4583_v62 }
 0x42b   : > { %v1561_v24 = vsel %vm1556_vm3, %v1244_v18, 0  ;;  %v1653_v25 = vsel %vm1556_vm3, %v1246_v21, 0  ;;  %v940_v42 = vpack.c.bf16 %v868_v31, %v868_v31  ;;  %v942_v43 = vpack.c.bf16 %v870_v32, %v870_v32 }
 0x42c   : > { %3405 = vmatpush3.bf16.xpose.msra.mxu0 %v1561_v24  ;;  %3417 = vmatpush3.bf16.xpose.msra.mxu1 %v1653_v25  ;;  %v1208_v28 = vcombine.low %v1183_v22, %v1191_v23  ;;  %v1224_v29 = vcombine.low %v1199_v19, %v1207_v20  ;;  %v1209_v30 = vcombine.high %v1183_v22, %v1191_v23  ;;  %v1607_v55 = vsel %vm1556_vm3, %v1245_v38, 0 }
 0x42d   : > { %3410 = vmatprep.subr.bf16.mxu0 %v4090_v17  ;;  %3428 = vmatprep.subr.bf16.mxu1 %v4090_v17  ;;  %v1225_v33 = vcombine.high %v1199_v19, %v1207_v20  ;;  %v912_v46 = vrot.slane %v904_v36, %v4594_v6  ;;  %v928_v47 = vrot.slane %v920_v37, %v4594_v6 }
 0x42e   : > { %v1216_v34 = vrot.slane %v1208_v28, %v4594_v6  ;;  %v1232_v35 = vrot.slane %v1224_v29, %v4594_v6  ;;  %v1223_v40 = vrot.slane %v1209_v30, %v4594_v6  ;;  %v1175_v56 = vcombine.high %v1155_v59, %v1171_v60 }
 0x42f   : > { %v1239_v41 = vrot.slane %v1225_v33, %v4594_v6  ;;  %v869_v61 = vcombine.high %v4623_v2, %v4626_v3  ;;  %v936_v63 = vcombine.low %v912_v46, %v928_v47  ;;  %v905_v59 = vcombine.high %v4657_v4, %v887_v5 }
 0x430   : > { %v1240_v39 = vcombine.low %v1216_v34, %v1232_v35  ;;  %v921_v60 = vcombine.high %v895_v15, %v903_v16  ;;  %v1247_v0 = vpack.c.bf16 %v1175_v56, %v1175_v56  ;;  %v1241_v3 = vcombine.high %v1216_v34, %v1232_v35 }
 0x431   : > { %v1242_v58 = vcombine.low %v1223_v40, %v1239_v41  ;;  %v941_v7 = vpack.c.bf16 %v869_v61, %v869_v61  ;;  %v944_v8 = vpack.c.bf16 %v936_v63, %v936_v63  ;;  %v919_v9 = vrot.slane %v905_v59, %v4594_v6 }
 0x432   : > { %v1248_v45 = vpack.c.bf16 %v1240_v39, %v1240_v39  ;;  %v935_v10 = vrot.slane %v921_v60, %v4594_v6  ;;  %v1699_v2 = vsel %vm1556_vm3, %v1247_v0, 0  ;;  %v871_v4 = vcombine.high %v4631_v12, %v4634_v13 }
 0x433   : > { %3407 = vmatmul.mubr.msk.bf16.vlgmr.msra.gmra.mrb[4].mxu0 %vm1556_vm3, %v940_v42  ;;  %3419 = vmatmul.mubr.msk.bf16.vlgmr.msra.gmra.mrb[0].mxu1 %vm1556_vm3, %v942_v43  ;;  %v1250_v1 = vpack.c.bf16 %v1242_v58, %v1242_v58  ;;  %v1249_v14 = vpack.c.bf16 %v1241_v3, %v1241_v3  ;;  %v1243_v12 = vcombine.high %v1223_v40, %v1239_v41 }
 0x434   : > { %3411 = vmatpush3.bf16.xpose.msra.mxu0 %v1607_v55  ;;  %v1745_v57 = vsel %vm1556_vm3, %v1248_v45, 0  ;;  %3412 = vmatprep.mubr.msk.bf16.mxu0 %vm4091_vm2, %v4090_v17  ;;  %v938_v5 = vcombine.low %v919_v9, %v935_v10  ;;  %v943_v15 = vpack.c.bf16 %v871_v4, %v871_v4  ;;  %v937_v13 = vcombine.high %v912_v46, %v928_v47 }
 0x435   : > { %3429 = vmatpush3.bf16.xpose.msra.mxu1 %v1745_v57  ;;  %3430 = vmatprep.mubr.msk.bf16.mxu1 %vm4091_vm2, %v4090_v17  ;;  %v1837_v11 = vsel %vm1556_vm3, %v1250_v1, 0  ;;  %v1791_v18 = vsel %vm1556_vm3, %v1249_v14, 0  ;;  %v1251_v21 = vpack.c.bf16 %v1243_v12, %v1243_v12  ;;  %v939_v19 = vcombine.high %v919_v9, %v935_v10 }
 0x436   : > { %3422 = vmatprep.subr.bf16.mxu0 %v4090_v17  ;;  %3440 = vmatprep.subr.bf16.mxu1 %v4090_v17  ;;  %v946_v16 = vpack.c.bf16 %v938_v5, %v938_v5  ;;  %v945_v22 = vpack.c.bf16 %v937_v13, %v937_v13 }
 0x437   : > { %v1883_v23 = vsel %vm1556_vm3, %v1251_v21, 0  ;;  %v947_v20 = vpack.c.bf16 %v939_v19, %v939_v19 }
 0x43b   : > { %3413 = vmatmul.mubr.msk.bf16.vlgmr.msra.gmra.mrb[8].mxu0 %vm1556_vm3, %v941_v7 }
 0x43c   : > { %3431 = vmatmul.mubr.msk.bf16.vlgmr.msra.gmra.mrb[4].mxu1 %vm1556_vm3, %v944_v8  ;;  %3423 = vmatpush3.bf16.xpose.msra.mxu0 %v1699_v2 }
 0x43d   : > { %3441 = vmatpush3.bf16.xpose.msra.mxu1 %v1837_v11  ;;  %3424 = vmatprep.mubr.msk.bf16.mxu0 %vm4091_vm2, %v4090_v17 }
 0x43e   : > { %3442 = vmatprep.mubr.msk.bf16.mxu1 %vm4091_vm2, %v4090_v17  ;;  %3434 = vmatprep.subr.bf16.mxu0 %v4090_v17 }
 0x43f   : > { %3452 = vmatprep.subr.bf16.mxu1 %v4090_v17 }
 0x443   : > { %3425 = vmatmul.mubr.msk.bf16.vlgmr.msra.gmra.mrb[12].mxu0 %vm1556_vm3, %v943_v15 }
 0x444   : > { %3443 = vmatmul.mubr.msk.bf16.vlgmr.msra.gmra.mrb[8].mxu1 %vm1556_vm3, %v946_v16  ;;  %3435 = vmatpush3.bf16.xpose.msra.mxu0 %v1791_v18 }
 0x445   : > { %3436 = vmatprep.mubr.msk.bf16.mxu0 %vm4091_vm2, %v4090_v17  ;;  %3446 = vmatprep.subr.bf16.mxu0 %v4090_v17 }
 0x446   : > { %3454 = vmatprep.mubr.msk.bf16.mxu1 %vm4091_vm2, %v4090_v17 }
 0x44b   : > { %3437 = vmatmul.mubr.msk.bf16.vlgmr.msra.gmra.mrb[16].mxu0 %vm1556_vm3, %v945_v22 }
 0x44c   : > { %3447 = vmatpush3.bf16.xpose.msra.mxu0 %v1883_v23  ;;  %3448 = vmatprep.mubr.msk.bf16.mxu0 %vm4091_vm2, %v4090_v17 }
 0x44d   : > { %3458 = vmatprep.subr.bf16.mxu0 %v4090_v17 }
 0x453   : > { %3449 = vmatmul.mubr.msk.bf16.vlgmr.msra.gmra.mrb[20].mxu0 %vm1556_vm3, %v947_v20 }
 0x454   : > { %3460 = vmatprep.mubr.msk.bf16.mxu0 %vm4091_vm2, %v4090_v17 }
 0x506   : > { %v1597_v24 = vpop.f32.mrb[4].mxu0  ;;  %v1689_v25 = vpop.f32.mrb[0].mxu1 }
 0x507   : > { %v1925_v28 = vmul.f32 0.35355338, %v1597_v24  ;;  %v1927_v29 = vmul.f32 0.35355338, %v1689_v25  ;;  %v3408_v30 = vpop.f32.mrb[5].mxu0  ;;  %v3420_v31 = vpop.f32.mrb[1].mxu1 }
 0x508   : > { %v1600_v32 = vpop.f32.mrb[6].mxu0  ;;  %v1692_v33 = vpop.f32.mrb[2].mxu1 }
 0x509   : > { %v3409_v34 = vpop.f32.mrb[7].mxu0  ;;  %v3421_v35 = vpop.f32.mrb[3].mxu1  ;;  %v1934_v36 = vadd.f32 %v1933_v27, %v1925_v28  ;;  %v4725_v38 = vadd.f32 %v1933_v27, %v1927_v29 }
 0x50b   : > { %v1942_v37 = vsel %vm1556_vm3, %v1934_v36, -inf  ;;  %v1948_v43 = vsel %vm1556_vm3, %v4725_v38, -inf }
 0x50c   : > { %1943 = vmax.xlane.f32.xlu0 %v1942_v37 }
 0x50e   : > { %v1643_v39 = vpop.f32.mrb[8].mxu0 }
 0x50f   : > { %v1926_v40 = vmul.f32 0.35355338, %v1643_v39  ;;  %v1781_v41 = vpop.f32.mrb[4].mxu1  ;;  %v3414_v42 = vpop.f32.mrb[9].mxu0 }
 0x510   : > { %v1929_v45 = vmul.f32 0.35355338, %v1781_v41  ;;  %v3432_v46 = vpop.f32.mrb[5].mxu1  ;;  %1949 = vmax.xlane.f32.xlu0 %v1948_v43  ;;  %v1646_v47 = vpop.f32.mrb[10].mxu0 }
 0x511   : > { %v1784_v55 = vpop.f32.mrb[6].mxu1  ;;  %v3415_v56 = vpop.f32.mrb[11].mxu0  ;;  %v1935_v57 = vadd.f32 %v1933_v27, %v1926_v40 }
 0x512   : > { %v3433_v58 = vpop.f32.mrb[7].mxu1  ;;  %v1938_v61 = vadd.f32 %v1933_v27, %v1929_v45 }
 0x513   : > { %v1945_v63 = vsel %vm1556_vm3, %v1935_v57, -inf }
 0x514   : > { %v1954_v59 = vsel %vm1556_vm3, %v1938_v61, -inf  ;;  %1946 = vmax.xlane.f32.xlu1 %v1945_v63 }
 0x515   : > { %1955 = vmax.xlane.f32.xlu0 %v1954_v59 }
 0x516   : > { %v1735_v60 = vpop.f32.mrb[12].mxu0 }
 0x517   : > { %v1928_v0 = vmul.f32 0.35355338, %v1735_v60  ;;  %v1873_v1 = vpop.f32.mrb[8].mxu1  ;;  %v3426_v7 = vpop.f32.mrb[13].mxu0 }
 0x518   : > { %v1931_v8 = vmul.f32 0.35355338, %v1873_v1  ;;  %v3444_v9 = vpop.f32.mrb[9].mxu1  ;;  %v1738_v10 = vpop.f32.mrb[14].mxu0 }
 0x519   : > { %v1876_v2 = vpop.f32.mrb[10].mxu1  ;;  %v3427_v3 = vpop.f32.mrb[15].mxu0  ;;  %v1937_v11 = vadd.f32 %v1933_v27, %v1928_v0 }
 0x51a   : > { %v3445_v4 = vpop.f32.mrb[11].mxu1  ;;  %v4732_v14 = vadd.f32 %v1933_v27, %v1931_v8 }
 0x51b   : > { %v1951_v5 = vsel %vm1556_vm3, %v1937_v11, -inf }
 0x51c   : > { %1952 = vmax.xlane.f32.xlu0 %v1951_v5  ;;  %v1960_v12 = vsel %vm1556_vm3, %v4732_v14, -inf }
 0x51e   : > { %v1827_v15 = vpop.f32.mrb[16].mxu0 }
 0x51f   : > { %v1930_v16 = vmul.f32 0.35355338, %v1827_v15  ;;  %v3438_v18 = vpop.f32.mrb[17].mxu0 }
 0x520   : > { %1961 = vmax.xlane.f32.xlu0 %v1960_v12  ;;  %v1830_v13 = vpop.f32.mrb[18].mxu0 }
 0x521   : > { %v3439_v21 = vpop.f32.mrb[19].mxu0  ;;  %v1939_v22 = vadd.f32 %v1933_v27, %v1930_v16 }
 0x523   : > { %v1957_v29 = vsel %vm1556_vm3, %v1939_v22, -inf }
 0x525   : > { %1254 = vrot.lane.b32.xlu1 %v4561_v50, %s4098_s26 }
 0x526   : > { %v1919_v23 = vpop.f32.mrb[20].mxu0 }
 0x527   : > { %v1932_v19 = vmul.f32 0.35355338, %v1919_v23  ;;  %v3450_v20 = vpop.f32.mrb[21].mxu0 }
 0x528   : > { %v1922_v24 = vpop.f32.mrb[22].mxu0 }
 0x529   : > { %1256 = vrot.lane.b32.xlu1 %v4559_v49, %s4098_s26  ;;  %v3451_v25 = vpop.f32.mrb[23].mxu0  ;;  %v1941_v28 = vadd.f32 %v1933_v27, %v1932_v19 }
 0x52b   : > { %v1963_v30 = vsel %vm1556_vm3, %v1941_v28, -inf }
 0x536   : > { %1252 = vrot.lane.b32.xlu0 %v4548_v44, %s4098_s26 }
 0x54d   : > { %1958 = vmax.xlane.f32.xlu1 %v1957_v29 }
 0x551   : > { %1964 = vmax.xlane.f32.xlu1 %v1963_v30 }
 0x562   : > { %1258 = vrot.lane.b32.xlu1 %v4565_v51, %s4098_s26 }
 0x599   : > { %v1944_v50 = vpop.xlane.xlu0 %1943 }
 0x59a   : > { %v1966_v31 = vsub.f32 %v1934_v36, %v1944_v50 }
 0x59c   : > { %v1974_v32 = vmul.f32 1.442695, %v1966_v31 }
 0x59d   : > { %v1950_v33 = vpop.xlane.xlu0 %1949 }
 0x59e   : > { %3699 = vpow2.f32 %v1974_v32  ;;  %v1968_v49 = vsub.f32 %v4725_v38, %v1950_v33 }
 0x5a0   : > { %v1978_v27 = vmul.f32 1.442695, %v1968_v49 }
 0x5a1   : > { %v1947_v34 = vpop.xlane.xlu1 %1946 }
 0x5a2   : > { %3701 = vpow2.f32 %v1978_v27  ;;  %v1956_v44 = vpop.xlane.xlu0 %1955  ;;  %v1967_v35 = vsub.f32 %v1935_v57, %v1947_v34 }
 0x5a3   : > { %v1970_v37 = vsub.f32 %v1938_v61, %v1956_v44 }
 0x5a4   : > { %v1976_v39 = vmul.f32 1.442695, %v1967_v35 }
 0x5a5   : > { %v1982_v40 = vmul.f32 1.442695, %v1970_v37  ;;  %v1255_v61 = vpop.permute.xlu1 %1254 }
 0x5a6   : > { %3703 = vpow2.f32 %v1976_v39 }
 0x5a7   : > { %3705 = vpow2.f32 %v1982_v40 }
 0x5a8   : > { %v4747_v41 = vpop.eup %3699 }
 0x5a9   : > { %v1953_v51 = vpop.xlane.xlu0 %1952  ;;  %v1990_v36 = vsel %vm1556_vm3, %v4747_v41, 0.0  ;;  %v1257_v63 = vpop.permute.xlu1 %1256 }
 0x5aa   : > { %v1969_v42 = vsub.f32 %v1937_v11, %v1953_v51  ;;  %1991 = vadd.xlane.f32.xlu0 %v1990_v36 }
 0x5ac   : > { %v4751_v43 = vpop.eup %3701  ;;  %v1980_v38 = vmul.f32 1.442695, %v1969_v42 }
 0x5ad   : > { %v1996_v45 = vsel %vm1556_vm3, %v4751_v43, 0.0  ;;  %v4773_v59 = vpop.xlane.xlu0 %1961 }
 0x5ae   : > { %3707 = vpow2.f32 %v1980_v38  ;;  %1997 = vadd.xlane.f32.xlu0 %v1996_v45 }
 0x5b0   : > { %v4755_v46 = vpop.eup %3703 }
 0x5b1   : > { %v4757_v47 = vpop.eup %3705  ;;  %v1993_v55 = vsel %vm1556_vm3, %v4755_v46, 0.0  ;;  %v1253_v7 = vpop.permute.xlu0 %1252 }
 0x5b2   : > { %v2002_v56 = vsel %vm1556_vm3, %v4757_v47, 0.0  ;;  %1994 = vadd.xlane.f32.xlu1 %v1993_v55  ;;  %v1276_v10 = vcombine.low %v1253_v7, %v1257_v63  ;;  %v1277_v2 = vcombine.high %v1253_v7, %v1257_v63 }
 0x5b3   : > { %2003 = vadd.xlane.f32.xlu0 %v2002_v56 }
 0x5b4   : > { %v1284_v4 = vrot.slane %v1276_v10, %v4583_v62 }
 0x5b8   : > { %v4763_v57 = vpop.eup %3707 }
 0x5b9   : > { %v1999_v58 = vsel %vm1556_vm3, %v4763_v57, 0.0 }
 0x5ba   : > { %2000 = vadd.xlane.f32.xlu1 %v1999_v58 }
 0x5cb   : > { %1262 = vrot.lane.b32.xlu1 %v4571_v53, %s4098_s26 }
 0x5cf   : > { %1264 = vrot.lane.b32.xlu1 %v4569_v52, %s4098_s26 }
 0x5d3   : > { %1266 = vrot.lane.b32.xlu1 %v4575_v54, %s4098_s26  ;;  %v1291_v54 = vrot.slane %v1277_v2, %v4583_v62 }
 0x5da   : > { %v1959_v60 = vpop.xlane.xlu1 %1958 }
 0x5db   : > { %v1971_v0 = vsub.f32 %v1939_v22, %v1959_v60  ;;  %v1972_v60 = vsub.f32 %v4732_v14, %v4773_v59 }
 0x5dd   : > { %v1984_v1 = vmul.f32 1.442695, %v1971_v0  ;;  %v1986_v0 = vmul.f32 1.442695, %v1972_v60 }
 0x5de   : > { %v1965_v8 = vpop.xlane.xlu1 %1964 }
 0x5df   : > { %3709 = vpow2.f32 %v1984_v1  ;;  %v1973_v9 = vsub.f32 %v1941_v28, %v1965_v8 }
 0x5e1   : > { %v1988_v52 = vmul.f32 1.442695, %v1973_v9 }
 0x5e2   : > { %v1259_v53 = vpop.permute.xlu1 %1258 }
 0x5e3   : > { %v1292_v3 = vcombine.low %v1255_v61, %v1259_v53  ;;  %v1293_v11 = vcombine.high %v1255_v61, %v1259_v53  ;;  %3711 = vpow2.f32 %v1988_v52 }
 0x5e4   : > { %3713 = vpow2.f32 %v1986_v0 }
 0x5e5   : > { %v1300_v5 = vrot.slane %v1292_v3, %v4583_v62  ;;  %v1307_v15 = vrot.slane %v1293_v11, %v4583_v62 }
 0x5e7   : > { %v1308_v16 = vcombine.low %v1284_v4, %v1300_v5  ;;  %v1309_v18 = vcombine.high %v1284_v4, %v1300_v5  ;;  %v1324_v12 = vcombine.low %v1291_v54, %v1307_v15  ;;  %v1325_v13 = vcombine.high %v1291_v54, %v1307_v15 }
 0x5e9   : > { %v4779_v21 = vpop.eup %3709  ;;  %v1316_v22 = vrot.slane %v1308_v16, %v4594_v6  ;;  %v1323_v23 = vrot.slane %v1309_v18, %v4594_v6  ;;  %v1332_v19 = vrot.slane %v1324_v12, %v4594_v6  ;;  %v1339_v20 = vrot.slane %v1325_v13, %v4594_v6 }
 0x5ea   : > { %v2005_v24 = vsel %vm1556_vm3, %v4779_v21, 0.0 }
 0x5eb   : > { %v1412_v25 = vcombine.low %v1316_v22, %v1323_v23  ;;  %v3296_v28 = vcombine.high %v1316_v22, %v1323_v23  ;;  %v1428_v29 = vcombine.low %v1332_v19, %v1339_v20  ;;  %v3297_v30 = vcombine.high %v1332_v19, %v1339_v20  ;;  %2006 = vadd.xlane.f32.xlu0 %v2005_v24 }
 0x5ed   : > { %v1419_v50 = vrot.slane %v1412_v25, %v4583_v62  ;;  %v1427_v31 = vrot.slane %v3296_v28, %v4583_v62  ;;  %v1435_v32 = vrot.slane %v1428_v29, %v4583_v62  ;;  %v1443_v33 = vrot.slane %v3297_v30, %v4583_v62  ;;  %v4795_v51 = vpop.eup %3711 }
 0x5ee   : > { %v2011_v58 = vsel %vm1556_vm3, %v4795_v51, 0.0  ;;  %v4807_v1 = vpop.eup %3713 }
 0x5ef   : > { %v1444_v49 = vcombine.low %v1419_v50, %v1427_v31  ;;  %v1460_v27 = vcombine.low %v1435_v32, %v1443_v33  ;;  %v1445_v34 = vcombine.high %v1419_v50, %v1427_v31  ;;  %v1461_v44 = vcombine.high %v1435_v32, %v1443_v33 }
 0x5f0   : > { %v2008_v7 = vsel %vm1556_vm3, %v4807_v1, 0.0 }
 0x5f1   : > { %v1452_v35 = vrot.slane %v1444_v49, %v4594_v6  ;;  %v1468_v37 = vrot.slane %v1460_v27, %v4594_v6  ;;  %v1459_v39 = vrot.slane %v1445_v34, %v4594_v6  ;;  %v1475_v40 = vrot.slane %v1461_v44, %v4594_v6 }
 0x5f3   : > { %v1476_v36 = vcombine.low %v1452_v35, %v1468_v37  ;;  %v1477_v42 = vcombine.high %v1452_v35, %v1468_v37  ;;  %v1478_v38 = vcombine.low %v1459_v39, %v1475_v40  ;;  %v1479_v45 = vcombine.high %v1459_v39, %v1475_v40 }
 0x5f5   : > { %v1548_v55 = vpack.c.bf16 %v1476_v36, %v1476_v36  ;;  %v1549_v56 = vpack.c.bf16 %v1477_v42, %v1477_v42  ;;  %v1550_v53 = vpack.c.bf16 %v1478_v38, %v1478_v38  ;;  %v1551_v54 = vpack.c.bf16 %v1479_v45, %v1479_v45 }
 0x5f7   : > { %2012 = vadd.xlane.f32.xlu1 %v2011_v58  ;;  %v2043_v61 = vsel %vm2041_vm4, %v1548_v55, 0  ;;  %v2089_v63 = vsel %vm2041_vm4, %v1549_v56, 0  ;;  %v2135_v59 = vsel %vm2041_vm4, %v1550_v53, 0  ;;  %v2181_v16 = vsel %vm2041_vm4, %v1551_v54, 0 }
 0x5f8   : > { %3453 = vmatpush3.bf16.msra.mxu1 %v2043_v61  ;;  %3459 = vmatpush3.bf16.msra.mxu0 %v2089_v63 }
 0x5f9   : > { %3464 = vmatprep.subr.bf16.mxu1 %v4090_v17  ;;  %3470 = vmatprep.subr.bf16.mxu0 %v4090_v17 }
 0x601   : > { %1260 = vrot.lane.b32.xlu0 %v4552_v48, %s4098_s26 }
 0x620   : > { %2009 = vadd.xlane.f32.xlu0 %v2008_v7 }
 0x637   : > { %v1992_v8 = vpop.xlane.xlu0 %1991 }
 0x638   : > { %3715 = vrcp.f32 %v1992_v8 }
 0x63b   : > { %v1998_v9 = vpop.xlane.xlu0 %1997 }
 0x63c   : > { %3717 = vrcp.f32 %v1998_v9 }
 0x63f   : > { %v1995_v10 = vpop.xlane.xlu1 %1994 }
 0x640   : > { %3719 = vrcp.f32 %v1995_v10  ;;  %v2004_v22 = vpop.xlane.xlu0 %2003 }
 0x642   : > { %v3716_v2 = vpop.eup %3715 }
 0x643   : > { %v2022_v48 = vmul.f32 %v3716_v2, %v4747_v41 }
 0x645   : > { %v2030_v3 = vpack.c.bf16 %v2022_v48, %v2022_v48 }
 0x646   : > { %v3718_v14 = vpop.eup %3717 }
 0x647   : > { %3455 = vmatmul.mubr.msk.bf16.vlgmr.msra.gmra.mrb[12].mxu1 %vm1556_vm3, %v2030_v3  ;;  %v2001_v11 = vpop.xlane.xlu1 %2000  ;;  %v2024_v52 = vmul.f32 %v3718_v14, %v4751_v43 }
 0x648   : > { %3465 = vmatpush3.bf16.msra.mxu1 %v2135_v59  ;;  %3721 = vrcp.f32 %v2001_v11  ;;  %3466 = vmatprep.mubr.msk.bf16.mxu1 %vm4091_vm2, %v4090_v17 }
 0x649   : > { %3476 = vmatprep.subr.bf16.mxu1 %v4090_v17  ;;  %v2032_v15 = vpack.c.bf16 %v2024_v52, %v2024_v52  ;;  %3723 = vrcp.f32 %v2004_v22 }
 0x64a   : > { %v3720_v4 = vpop.eup %3719 }
 0x64b   : > { %v2023_v41 = vmul.f32 %v3720_v4, %v4755_v46  ;;  %v1263_v12 = vpop.permute.xlu1 %1262 }
 0x64d   : > { %v2031_v5 = vpack.c.bf16 %v2023_v41, %v2023_v41 }
 0x64f   : > { %3461 = vmatmul.mubr.msk.bf16.vlgmr.msra.gmra.mrb[24].mxu0 %vm1556_vm3, %v2031_v5  ;;  %3467 = vmatmul.mubr.msk.bf16.vlgmr.msra.gmra.mrb[16].mxu1 %vm1556_vm3, %v2032_v15  ;;  %v1265_v13 = vpop.permute.xlu1 %1264 }
 0x650   : > { %3471 = vmatpush3.bf16.msra.mxu0 %v2181_v16  ;;  %3472 = vmatprep.mubr.msk.bf16.mxu0 %vm4091_vm2, %v4090_v17 }
 0x651   : > { %3482 = vmatprep.subr.bf16.mxu0 %v4090_v17  ;;  %3478 = vmatprep.mubr.msk.bf16.mxu1 %vm4091_vm2, %v4090_v17 }
 0x652   : > { %v3722_v43 = vpop.eup %3721 }
 0x653   : > { %v2025_v46 = vmul.f32 %v3722_v43, %v4763_v57  ;;  %v1267_v23 = vpop.permute.xlu1 %1266  ;;  %v3724_v7 = vpop.eup %3723 }
 0x654   : > { %v1360_v20 = vcombine.low %v1263_v12, %v1267_v23  ;;  %v1361_v24 = vcombine.high %v1263_v12, %v1267_v23  ;;  %v2026_v11 = vmul.f32 %v3724_v7, %v4757_v47 }
 0x655   : > { %v2033_v18 = vpack.c.bf16 %v2025_v46, %v2025_v46 }
 0x656   : > { %v1368_v30 = vrot.slane %v1360_v20, %v4583_v62  ;;  %v1375_v57 = vrot.slane %v1361_v24, %v4583_v62  ;;  %v2034_v43 = vpack.c.bf16 %v2026_v11, %v2026_v11 }
 0x657   : > { %3473 = vmatmul.mubr.msk.bf16.vlgmr.msra.gmra.mrb[28].mxu0 %vm1556_vm3, %v2033_v18 }
 0x658   : > { %3484 = vmatprep.mubr.msk.bf16.mxu0 %vm4091_vm2, %v4090_v17 }
 0x678   : > { %v2007_v19 = vpop.xlane.xlu0 %2006 }
 0x679   : > { %3725 = vrcp.f32 %v2007_v19 }
 0x67c   : > { %v1261_v25 = vpop.permute.xlu0 %1260 }
 0x67d   : > { %v1344_v28 = vcombine.low %v1261_v25, %v1265_v13  ;;  %v1345_v29 = vcombine.high %v1261_v25, %v1265_v13 }
 0x67f   : > { %v1352_v50 = vrot.slane %v1344_v28, %v4583_v62  ;;  %v1359_v31 = vrot.slane %v1345_v29, %v4583_v62 }
 0x681   : > { %v1376_v32 = vcombine.low %v1352_v50, %v1368_v30  ;;  %v1377_v33 = vcombine.high %v1352_v50, %v1368_v30  ;;  %v1392_v49 = vcombine.low %v1359_v31, %v1375_v57  ;;  %v1393_v27 = vcombine.high %v1359_v31, %v1375_v57 }
 0x683   : > { %v1384_v34 = vrot.slane %v1376_v32, %v4594_v6  ;;  %v1391_v44 = vrot.slane %v1377_v33, %v4594_v6  ;;  %v1400_v35 = vrot.slane %v1392_v49, %v4594_v6  ;;  %v1407_v37 = vrot.slane %v1393_v27, %v4594_v6  ;;  %v3726_v48 = vpop.eup %3725 }
 0x684   : > { %v2013_v58 = vpop.xlane.xlu1 %2012  ;;  %v2027_v52 = vmul.f32 %v3726_v48, %v4779_v21 }
 0x685   : > { %v1480_v39 = vcombine.low %v1384_v34, %v1391_v44  ;;  %v3298_v40 = vcombine.high %v1384_v34, %v1391_v44  ;;  %v1496_v36 = vcombine.low %v1400_v35, %v1407_v37  ;;  %v3299_v42 = vcombine.high %v1400_v35, %v1407_v37 }
 0x686   : > { %3727 = vrcp.f32 %v2013_v58  ;;  %v2035_v46 = vpack.c.bf16 %v2027_v52, %v2027_v52 }
 0x687   : > { %v1487_v38 = vrot.slane %v1480_v39, %v4583_v62  ;;  %v1495_v45 = vrot.slane %v3298_v40, %v4583_v62  ;;  %v1503_v55 = vrot.slane %v1496_v36, %v4583_v62  ;;  %v1511_v56 = vrot.slane %v3299_v42, %v4583_v62 }
 0x689   : > { %v1512_v61 = vcombine.low %v1487_v38, %v1495_v45  ;;  %v1528_v63 = vcombine.low %v1503_v55, %v1511_v56  ;;  %v1513_v60 = vcombine.high %v1487_v38, %v1495_v45  ;;  %v1529_v0 = vcombine.high %v1503_v55, %v1511_v56 }
 0x68b   : > { %v1520_v8 = vrot.slane %v1512_v61, %v4594_v6  ;;  %v1536_v9 = vrot.slane %v1528_v63, %v4594_v6  ;;  %v1527_v10 = vrot.slane %v1513_v60, %v4594_v6  ;;  %v1543_v2 = vrot.slane %v1529_v0, %v4594_v6 }
 0x68d   : > { %v1544_v53 = vcombine.low %v1520_v8, %v1536_v9  ;;  %v1545_v3 = vcombine.high %v1520_v8, %v1536_v9  ;;  %v1546_v14 = vcombine.low %v1527_v10, %v1543_v2  ;;  %v1547_v59 = vcombine.high %v1527_v10, %v1543_v2 }
 0x68f   : > { %v1552_v4 = vpack.c.bf16 %v1544_v53, %v1544_v53  ;;  %v1553_v41 = vpack.c.bf16 %v1545_v3, %v1545_v3  ;;  %v1554_v15 = vpack.c.bf16 %v1546_v14, %v1546_v14  ;;  %v1555_v16 = vpack.c.bf16 %v1547_v59, %v1547_v59 }
 0x690   : > { %v3728_v18 = vpop.eup %3727 }
 0x691   : > { %v2227_v54 = vsel %vm2041_vm4, %v1552_v4, 0  ;;  %v2273_v5 = vsel %vm2041_vm4, %v1553_v41, 0  ;;  %v2319_v47 = vsel %vm2041_vm4, %v1554_v15, 0  ;;  %v2365_v21 = vsel %vm2041_vm4, %v1555_v16, 0 }
 0x692   : > { %3477 = vmatpush3.bf16.msra.mxu1 %v2227_v54  ;;  %3483 = vmatpush3.bf16.msra.mxu0 %v2273_v5  ;;  %v2029_v12 = vmul.f32 %v3728_v18, %v4795_v51 }
 0x693   : > { %3488 = vmatprep.subr.bf16.mxu1 %v4090_v17  ;;  %3494 = vmatprep.subr.bf16.mxu0 %v4090_v17 }
 0x694   : > { %v2037_v13 = vpack.c.bf16 %v2029_v12, %v2029_v12 }
 0x695   : > { %3479 = vmatmul.mubr.msk.bf16.vlgmr.msra.gmra.mrb[20].mxu1 %vm1556_vm3, %v2034_v43  ;;  %3485 = vmatmul.mubr.msk.bf16.vlgmr.msra.gmra.mrb[32].mxu0 %vm1556_vm3, %v2035_v46 }
 0x696   : > { %3489 = vmatpush3.bf16.msra.mxu1 %v2319_v47  ;;  %3495 = vmatpush3.bf16.msra.mxu0 %v2365_v21 }
 0x697   : > { %3496 = vmatprep.mubr.msk.bf16.mxu0 %vm4091_vm2, %v4090_v17  ;;  %3490 = vmatprep.mubr.msk.bf16.mxu1 %vm4091_vm2, %v4090_v17 }
 0x698   : > { %3500 = vmatprep.subr.bf16.mxu1 %v4090_v17  ;;  %3508 = vmatprep.subr.bf16.mxu0 %v4090_v17 }
 0x69d   : > { %3497 = vmatmul.mubr.msk.bf16.vlgmr.msra.gmra.mrb[36].mxu0 %vm1556_vm3, %v2037_v13 }
 0x69e   : > { %3512 = vmatprep.mubr.msk.bf16.mxu0 %vm4091_vm2, %v4090_v17 }
 0x6ad   : > { %v2010_v22 = vpop.xlane.xlu0 %2009 }
 0x6ae   : > { %3729 = vrcp.f32 %v2010_v22 }
 0x6b8   : > { %v3730_v23 = vpop.eup %3729 }
 0x6b9   : > { %v2028_v51 = vmul.f32 %v3730_v23, %v4807_v1 }
 0x6bb   : > { %v2036_v19 = vpack.c.bf16 %v2028_v51, %v2028_v51 }
 0x6bd   : > { %3491 = vmatmul.mubr.msk.bf16.vlgmr.msra.gmra.mrb[24].mxu1 %vm1556_vm3, %v2036_v19 }
 0x6be   : > { %3504 = vmatprep.mubr.msk.bf16.mxu1 %vm4091_vm2, %v4090_v17 }
 0x71a   : > { %v2079_v20 = vpop.f32.mrb[12].mxu1 }
 0x71b   : > { %v3456_v24 = vpop.f32.mrb[13].mxu1 }
 0x71c   : > { %v2082_v25 = vpop.f32.mrb[14].mxu1 }
 0x71d   : > { %v3457_v28 = vpop.f32.mrb[15].mxu1 }
 0x722   : > { %v2125_v29 = vpop.f32.mrb[24].mxu0  ;;  %v2171_v30 = vpop.f32.mrb[16].mxu1 }
 0x723   : > { %v2407_v57 = vcombine.low %v2079_v20, %v2171_v30  ;;  %v2408_v50 = vcombine.high %v2079_v20, %v2171_v30  ;;  %v3462_v31 = vpop.f32.mrb[25].mxu0  ;;  %v3468_v32 = vpop.f32.mrb[17].mxu1 }
 0x724   : > { %v2128_v33 = vpop.f32.mrb[26].mxu0  ;;  %v2174_v49 = vpop.f32.mrb[18].mxu1 }
 0x725   : > { %v3463_v27 = vpop.f32.mrb[27].mxu0  ;;  %v3469_v1 = vpop.f32.mrb[19].mxu1  ;;  %v2415_v40 = vrot.slane %v2407_v57, %v4583_v62  ;;  %v2422_v36 = vrot.slane %v2408_v50, %v4583_v62 }
 0x72a   : > { %v2217_v34 = vpop.f32.mrb[28].mxu0 }
 0x72b   : > { %v2423_v44 = vcombine.low %v2125_v29, %v2217_v34  ;;  %v2424_v35 = vcombine.high %v2125_v29, %v2217_v34  ;;  %v3474_v37 = vpop.f32.mrb[29].mxu0 }
 0x72c   : > { %v2220_v39 = vpop.f32.mrb[30].mxu0 }
 0x72d   : > { %v2431_v42 = vrot.slane %v2423_v44, %v4583_v62  ;;  %v2438_v38 = vrot.slane %v2424_v35, %v4583_v62  ;;  %v3475_v45 = vpop.f32.mrb[31].mxu0 }
 0x72f   : > { %v2439_v55 = vcombine.low %v2415_v40, %v2431_v42  ;;  %v2440_v56 = vcombine.high %v2415_v40, %v2431_v42  ;;  %v2455_v58 = vcombine.low %v2422_v36, %v2438_v38  ;;  %v2456_v61 = vcombine.high %v2422_v36, %v2438_v38 }
 0x731   : > { %v2447_v63 = vrot.slane %v2439_v55, %v4594_v6  ;;  %v2454_v60 = vrot.slane %v2440_v56, %v4594_v6  ;;  %v2463_v0 = vrot.slane %v2455_v58, %v4594_v6  ;;  %v2470_v7 = vrot.slane %v2456_v61, %v4594_v6 }
 0x733   : > { %v2543_v8 = vcombine.low %v2447_v63, %v2454_v60  ;;  %v3316_v9 = vcombine.high %v2447_v63, %v2454_v60  ;;  %v2559_v10 = vcombine.low %v2463_v0, %v2470_v7  ;;  %v3317_v2 = vcombine.high %v2463_v0, %v2470_v7  ;;  %v3683_v63 = vld [vmem:[%s462_s30] sm:$0xff]  }
 0x734   : > { %3501 = vmatpush3.bf16.msra.mxu1 %v3683_v63  ;;  %v3685_v63 = vld [vmem:[%s471_s17] sm:$0xff]  }
 0x735   : > { %v2550_v48 = vrot.slane %v2543_v8, %v4583_v62  ;;  %v2558_v53 = vrot.slane %v3316_v9, %v4583_v62  ;;  %v2566_v3 = vrot.slane %v2559_v10, %v4583_v62  ;;  %v2574_v14 = vrot.slane %v3317_v2, %v4583_v62  ;;  %3502 = vmatprep.subr.bf16.mxu1 %v4090_v17 }
 0x736   : > { %3509 = vmatpush3.bf16.msra.mxu0 %v3685_v63 }
 0x737   : > { %v2576_v59 = vcombine.high %v2550_v48, %v2558_v53  ;;  %v2592_v11 = vcombine.high %v2566_v3, %v2574_v14  ;;  %v2575_v52 = vcombine.low %v2550_v48, %v2558_v53  ;;  %v2591_v4 = vcombine.low %v2566_v3, %v2574_v14  ;;  %v3684_v53 = vld [vmem:[%s462_s30 + $0x8] sm:$0xff]   ;;  %3510 = vmatprep.subr.bf16.mxu0 %v4090_v17 }
 0x738   : > { %3503 = vmatpush3.bf16.msra.mxu1 %v3684_v53 }
 0x739   : > { %v4884_v41 = vrot.slane %v2576_v59, %v4594_v6  ;;  %v4887_v54 = vrot.slane %v2592_v11, %v4594_v6  ;;  %v4890_v5 = vrot.slane %v2575_v52, %v4594_v6  ;;  %v4893_v15 = vrot.slane %v2591_v4, %v4594_v6  ;;  %3516 = vmatprep.subr.bf16.mxu1 %v4090_v17 }
 0x73b   : > { %v2609_v16 = vcombine.low %v4884_v41, %v4887_v54  ;;  %v2607_v43 = vcombine.low %v4890_v5, %v4893_v15  ;;  %v2608_v46 = vcombine.high %v4890_v5, %v4893_v15  ;;  %v2610_v18 = vcombine.high %v4884_v41, %v4887_v54  ;;  %v4936_v15 = vld [vmem:[%s4501_s27] sm:$0xff] }
 0x73c   : > { %v2718_v5 = vsub.s32 5, %v4539_v26 }
 0x768   : > { %v2263_v47 = vpop.f32.mrb[20].mxu1  ;;  %v2309_v21 = vpop.f32.mrb[32].mxu0 }
 0x769   : > { %v3480_v12 = vpop.f32.mrb[21].mxu1  ;;  %v3486_v13 = vpop.f32.mrb[33].mxu0 }
 0x76a   : > { %v2266_v22 = vpop.f32.mrb[22].mxu1  ;;  %v2312_v23 = vpop.f32.mrb[34].mxu0 }
 0x76b   : > { %v3481_v51 = vpop.f32.mrb[23].mxu1  ;;  %v3487_v19 = vpop.f32.mrb[35].mxu0 }
 0x770   : > { %v2401_v20 = vpop.f32.mrb[36].mxu0 }
 0x771   : > { %v2491_v24 = vcombine.low %v2309_v21, %v2401_v20  ;;  %v2492_v25 = vcombine.high %v2309_v21, %v2401_v20  ;;  %v3498_v28 = vpop.f32.mrb[37].mxu0 }
 0x772   : > { %v2404_v29 = vpop.f32.mrb[38].mxu0 }
 0x773   : > { %v3499_v30 = vpop.f32.mrb[39].mxu0  ;;  %v2499_v49 = vrot.slane %v2491_v24, %v4583_v62  ;;  %v2506_v27 = vrot.slane %v2492_v25, %v4583_v62 }
 0x790   : > { %v2355_v57 = vpop.f32.mrb[24].mxu1 }
 0x791   : > { %v2475_v50 = vcombine.low %v2263_v47, %v2355_v57  ;;  %v2476_v31 = vcombine.high %v2263_v47, %v2355_v57  ;;  %v3492_v32 = vpop.f32.mrb[25].mxu1 }
 0x792   : > { %v2358_v33 = vpop.f32.mrb[26].mxu1 }
 0x793   : > { %v2483_v1 = vrot.slane %v2475_v50, %v4583_v62  ;;  %v2490_v34 = vrot.slane %v2476_v31, %v4583_v62  ;;  %v3493_v44 = vpop.f32.mrb[27].mxu1  ;;  %v3740_v33 = vld [vmem:[#allocation16] sm:$0xff] }
 0x795   : > { %v2507_v35 = vcombine.low %v2483_v1, %v2499_v49  ;;  %v2508_v37 = vcombine.high %v2483_v1, %v2499_v49  ;;  %v2523_v39 = vcombine.low %v2490_v34, %v2506_v27  ;;  %v2524_v40 = vcombine.high %v2490_v34, %v2506_v27  ;;  %v3741_v34 = vld [vmem:[#allocation16 + $0x8] sm:$0xff] }
 0x797   : > { %v2515_v36 = vrot.slane %v2507_v35, %v4594_v6  ;;  %v2522_v42 = vrot.slane %v2508_v37, %v4594_v6  ;;  %v2531_v38 = vrot.slane %v2523_v39, %v4594_v6  ;;  %v2538_v45 = vrot.slane %v2524_v40, %v4594_v6 }
 0x799   : > { %v2611_v55 = vcombine.low %v2515_v36, %v2522_v42  ;;  %v3318_v56 = vcombine.high %v2515_v36, %v2522_v42  ;;  %v2627_v58 = vcombine.low %v2531_v38, %v2538_v45  ;;  %v3319_v61 = vcombine.high %v2531_v38, %v2538_v45 }
 0x79b   : > { %v2618_v60 = vrot.slane %v2611_v55, %v4583_v62  ;;  %v2626_v0 = vrot.slane %v3318_v56, %v4583_v62  ;;  %v2634_v7 = vrot.slane %v2627_v58, %v4583_v62  ;;  %v2642_v8 = vrot.slane %v3319_v61, %v4583_v62 }
 0x79d   : > { %v2644_v9 = vcombine.high %v2618_v60, %v2626_v0  ;;  %v2660_v10 = vcombine.high %v2634_v7, %v2642_v8  ;;  %v2643_v2 = vcombine.low %v2618_v60, %v2626_v0  ;;  %v2659_v48 = vcombine.low %v2634_v7, %v2642_v8  ;;  %v3686_v60 = vld [vmem:[%s471_s17 + $0x8] sm:$0xff]  }
 0x79e   : > { %3511 = vmatpush3.bf16.msra.mxu0 %v3686_v60 }
 0x79f   : > { %v2658_v3 = vrot.slane %v2644_v9, %v4594_v6  ;;  %v2674_v14 = vrot.slane %v2660_v10, %v4594_v6  ;;  %v2651_v59 = vrot.slane %v2643_v2, %v4594_v6  ;;  %v2667_v11 = vrot.slane %v2659_v48, %v4594_v6 }
 0x7a0   : > { %v2806_v48 = vsub.s32 2, %v4539_v26 }
 0x7a1   : > { %v2677_v52 = vcombine.low %v2658_v3, %v2674_v14  ;;  %v2676_v62 = vcombine.high %v2651_v59, %v2667_v11  ;;  %v2675_v4 = vcombine.low %v2651_v59, %v2667_v11  ;;  %v2678_v41 = vcombine.high %v2658_v3, %v2674_v14 }
 0x7a2   : > { %v2807_v3 = vrot.slane %v4936_v15, %v2806_v48  ;;  %v2812_v59 = vsub.s32 3, %v4539_v26 }
 0x7a3   : > { %v3671_v54 = vpack.i.bf16 %v2677_v52, %v2609_v16  ;;  %v3666_v47 = vpack.i.bf16 %v2676_v62, %v2608_v46  ;;  %v3676_v21 = vpack.i.bf16 %v2678_v41, %v2610_v18 }
 0x7a5   : > { %3672 = vrot.lane.b32.xlu1 %v3671_v54, %s4099_s18  ;;  %3667 = vrot.lane.b32.xlu0 %v3666_v47, %s4100_s19 }
 0x7a9   : > { %3677 = vrot.lane.b32.xlu0 %v3676_v21, %s4101_s29 }
 0x817   : > { %v3673_v12 = vpop.permute.xlu1 %3672  ;;  %v3668_v13 = vpop.permute.xlu0 %3667 }
 0x818   : > { %v3670_v6 = vunpack.i.h.bf16 %v3668_v13  ;;  %v3669_v22 = vunpack.i.l.bf16 %v3668_v13  ;;  %v3675_v23 = vunpack.i.h.bf16 %v3673_v12  ;;  %v3674_v51 = vunpack.i.l.bf16 %v3673_v12  ;;  %v3687_v12 = vld [vmem:[%s4516_s12] sm:$0xff]   ;;  %v3688_v13 = vld [vmem:[%s4516_s12 + $0x8] sm:$0xff]  }
 0x81a   : > { %v2703_v16 = vsel %vm1556_vm3, %v2607_v43, %v3669_v22  ;;  %v2704_v46 = vsel %vm1556_vm3, %v2675_v4, %v3670_v6  ;;  %v2719_v43 = vrot.slane %v4936_v15, %v2718_v5  ;;  %v2813_v4 = vrot.slane %v4936_v15, %v2812_v59  ;;  %v3689_v6 = vld [vmem:[%s4516_s12 + $0x10] sm:$0xff]   ;;  %v3690_v22 = vld [vmem:[%s4516_s12 + $0x18] sm:$0xff]  }
 0x81b   : > { %v3678_v18 = vpop.permute.xlu0 %3677  ;;  %v2706_v24 = vsel %vm2705_vm5, %v2703_v16, %v3674_v51  ;;  %v2707_v25 = vsel %vm2705_vm5, %v2704_v46, %v3675_v23  ;;  %v3691_v23 = vld [vmem:[%s4516_s12 + $0x20] sm:$0xff]   ;;  %v3692_v51 = vld [vmem:[%s4516_s12 + $0x28] sm:$0xff]   ;;  %v3693_v16 = vld [vmem:[%s4516_s12 + $0x30] sm:$0xff]  }
 0x81c   : > { %v3680_v19 = vunpack.i.h.bf16 %v3678_v18  ;;  %v3679_v20 = vunpack.i.l.bf16 %v3678_v18  ;;  %v3694_v46 = vld [vmem:[%s4516_s12 + $0x38] sm:$0xff]   ;;  %v2823_v18 = vsub.s32 6, %v4539_v26 }
 0x81e   : > { %v2709_v28 = vsel %vm2708_vm6, %v2706_v24, %v3679_v20  ;;  %v2710_v29 = vsel %vm2708_vm6, %v2707_v25, %v3680_v19  ;;  %v2824_v19 = vrot.slane %v4936_v15, %v2823_v18 }
 0x81f   : > { %v2711_v30 = vpack.c.bf16 %v2710_v29, %v2709_v28 }
 0x821   : > { %3505 = vmatmul.mubr.msk.bf16.vlgmr.msra.gmra.mrb[28].mxu1 %vm543_vm1, %v2711_v30 }
 0x822   : > { %3532 = vmatprep.mubr.msk.bf16.mxu1 %vm4091_vm2, %v4090_v17  ;;  %3517 = vmatpush3.bf16.msra.mxu1 %v3687_v12 }
 0x823   : > { %3518 = vmatprep.subr.bf16.mxu1 %v4090_v17 }
 0x826   : > { %3519 = vmatpush3.bf16.msra.mxu1 %v3688_v13 }
 0x827   : > { %3520 = vmatprep.subr.bf16.mxu1 %v4090_v17 }
 0x82a   : > { %3521 = vmatpush3.bf16.msra.mxu1 %v3689_v6 }
 0x82b   : > { %3522 = vmatprep.subr.bf16.mxu1 %v4090_v17 }
 0x82e   : > { %3523 = vmatpush3.bf16.msra.mxu1 %v3690_v22 }
 0x82f   : > { %3524 = vmatprep.subr.bf16.mxu1 %v4090_v17 }
 0x832   : > { %3525 = vmatpush3.bf16.msra.mxu1 %v3691_v23 }
 0x833   : > { %3526 = vmatprep.subr.bf16.mxu1 %v4090_v17 }
 0x836   : > { %3527 = vmatpush3.bf16.msra.mxu1 %v3692_v51 }
 0x837   : > { %3528 = vmatprep.subr.bf16.mxu1 %v4090_v17 }
 0x83a   : > { %3529 = vmatpush3.bf16.msra.mxu1 %v3693_v16 }
 0x83b   : > { %3530 = vmatprep.subr.bf16.mxu1 %v4090_v17 }
 0x83e   : > { %3531 = vmatpush3.bf16.msra.mxu1 %v3694_v46 }
 0x8f4   : > { %v2769_v57 = vpop.f32.mrb[28].mxu1 }
 0x8f5   : > { %v2770_v50 = vadd.f32 %v2769_v57, %v2719_v43  ;;  %v3506_v31 = vpop.f32.mrb[29].mxu1 }
 0x8f6   : > { %v2772_v32 = vpop.f32.mrb[30].mxu1 }
 0x8f7   : > { %v4939_v49 = vadd.f32 %v3740_v33, %v2770_v50  ;;  %v2773_v27 = vadd.f32 %v2772_v32, %v2719_v43  ;;  %v3507_v1 = vpop.f32.mrb[31].mxu1 }
 0x8f9   : > { %v4941_v44 = vadd.f32 %v3741_v34, %v2773_v27  ;;  %v2778_v35 = vsel %vm543_vm1, %v4939_v49, 0.0 }
 0x8fa   : > { %2779 = vadd.xlane.f32.xlu1 %v2778_v35 }
 0x8fb   : > { %v2781_v37 = vsel %vm543_vm1, %v4941_v44, 0.0 }
 0x8fc   : > { %2782 = vadd.xlane.f32.xlu0 %v2781_v37 }
 0x987   : > { %v2780_v39 = vpop.xlane.xlu1 %2779 }
 0x988   : > { %v2784_v40 = vmul.f32 0.03125, %v2780_v39 }
 0x989   : > { %v2783_v36 = vpop.xlane.xlu0 %2782 }
 0x98a   : > { %v2786_v42 = vsub.f32 %v4939_v49, %v2784_v40  ;;  %v2785_v38 = vmul.f32 0.03125, %v2783_v36 }
 0x98c   : > { %v2787_v45 = vsub.f32 %v4941_v44, %v2785_v38  ;;  %v2788_v55 = vmul.f32 %v2786_v42, %v2786_v42 }
 0x98e   : > { %v2790_v56 = vsel %vm543_vm1, %v2788_v55, 0.0  ;;  %v2789_v58 = vmul.f32 %v2787_v45, %v2787_v45  ;;  %v2918_v55 = vsub.s32 7, %v4539_v26 }
 0x98f   : > { %2791 = vadd.xlane.f32.xlu0 %v2790_v56 }
 0x990   : > { %v2793_v61 = vsel %vm543_vm1, %v2789_v58, 0.0  ;;  %v2919_v56 = vrot.slane %v4936_v15, %v2918_v55 }
 0x993   : > { %2794 = vadd.xlane.f32.xlu0 %v2793_v61 }
 0xa1c   : > { %v2792_v0 = vpop.xlane.xlu0 %2791 }
 0xa1d   : > { %v2796_v7 = vmul.f32 0.03125, %v2792_v0 }
 0xa1f   : > { %v2798_v8 = vadd.f32 1e-05, %v2796_v7 }
 0xa20   : > { %v2795_v9 = vpop.xlane.xlu0 %2794 }
 0xa21   : > { %3731 = vrsqrt.f32 %v2798_v8  ;;  %v2797_v10 = vmul.f32 0.03125, %v2795_v9 }
 0xa23   : > { %v2799_v2 = vadd.f32 1e-05, %v2797_v10 }
 0xa25   : > { %3733 = vrsqrt.f32 %v2799_v2 }
 0xa2b   : > { %v3732_v53 = vpop.eup %3731 }
 0xa2c   : > { %v2802_v14 = vmul.f32 %v3732_v53, %v2786_v42 }
 0xa2e   : > { %v2808_v52 = vmul.f32 %v2807_v3, %v2802_v14 }
 0xa2f   : > { %v3734_v11 = vpop.eup %3733 }
 0xa30   : > { %v2803_v62 = vmul.f32 %v3734_v11, %v2787_v45  ;;  %v2814_v54 = vadd.f32 %v2813_v4, %v2808_v52 }
 0xa32   : > { %v2809_v41 = vmul.f32 %v2807_v3, %v2803_v62 }
 0xa34   : > { %v2815_v47 = vadd.f32 %v2813_v4, %v2809_v41 }
 0xa36   : > { %v2816_v21 = vpack.c.bf16 %v2815_v47, %v2814_v54 }
 0xa38   : > { %3513 = vmatmul.mubr.msk.bf16.vlgmr.msra.gmra.mrb[40].mxu0 %vm543_vm1, %v2816_v21 }
 0xb0b   : > { %v2874_v20 = vpop.f32.mrb[40].mxu0 }
 0xb0c   : > { %v2875_v24 = vadd.f32 %v2874_v20, %v2824_v19  ;;  %v3514_v25 = vpop.f32.mrb[41].mxu0 }
 0xb0d   : > { %v2877_v28 = vpop.f32.mrb[42].mxu0 }
 0xb0e   : > { %v2883_v29 = vmul.f32 0.044715, %v2875_v24  ;;  %v2878_v30 = vadd.f32 %v2877_v28, %v2824_v19  ;;  %v3515_v5 = vpop.f32.mrb[43].mxu0  ;;  %v2881_v39 = vmul.f32 0.5, %v2875_v24 }
 0xb10   : > { %v2885_v43 = vmul.f32 %v2883_v29, %v2875_v24  ;;  %v2884_v57 = vmul.f32 0.044715, %v2878_v30  ;;  %v2882_v40 = vmul.f32 0.5, %v2878_v30 }
 0xb12   : > { %v2887_v50 = vmul.f32 %v2885_v43, %v2875_v24  ;;  %v2886_v31 = vmul.f32 %v2884_v57, %v2878_v30 }
 0xb14   : > { %v2889_v32 = vadd.f32 %v2887_v50, %v2875_v24  ;;  %v2888_v33 = vmul.f32 %v2886_v31, %v2878_v30 }
 0xb16   : > { %v2891_v27 = vmul.f32 0.7978846, %v2889_v32  ;;  %v2890_v17 = vadd.f32 %v2888_v33, %v2878_v30 }
 0xb18   : > { %3735 = vtanh.f32 %v2891_v27  ;;  %v2892_v1 = vmul.f32 0.7978846, %v2890_v17 }
 0xb1a   : > { %3737 = vtanh.f32 %v2892_v1 }
 0xb22   : > { %v3736_v34 = vpop.eup %3735 }
 0xb23   : > { %v2895_v35 = vadd.f32 1.0, %v3736_v34 }
 0xb24   : > { %v3738_v37 = vpop.eup %3737 }
 0xb25   : > { %v2896_v36 = vadd.f32 1.0, %v3738_v37  ;;  %v2897_v42 = vmul.f32 %v2895_v35, %v2881_v39 }
 0xb27   : > { %v2898_v38 = vmul.f32 %v2896_v36, %v2882_v40 }
 0xb29   : > { %v2899_v45 = vpack.c.bf16 %v2898_v38, %v2897_v42 }
 0xb2b   : > { %3533 = vmatmul.mubr.bf16.vlgmr.msra.gmra.mrb[32].mxu1 %v2899_v45 }
 0xbfd   : > { %3014 = sbr.rel (%p3334_p2) target bundleno = 3078 (0xc06), region = 92 }
 0xbfe   : > { %v3002_v58 = vpop.f32.mrb[32].mxu1 }
 0xbff   : > { %v3003_v61 = vadd.f32 %v3002_v58, %v2919_v56  ;;  %v3534_v63 = vpop.f32.mrb[33].mxu1 }
 0xc00   : > { %v3005_v60 = vpop.f32.mrb[34].mxu1 }
 0xc01   : > { %v3009_v0 = vadd.f32 %v3003_v61, %v4939_v49  ;;  %v3006_v7 = vadd.f32 %v3005_v60, %v2919_v56  ;;  %v3535_v8 = vpop.f32.mrb[35].mxu1 }
 0xc03   : > { %v3010_v9 = vadd.f32 %v3006_v7, %v4941_v44  ;;  %3015 = vst.msk [vmem:[#allocation16] sm:$0xff] (!%p3334_p2), %vm543_vm1, %v3009_v0 }
 0xc05   : > { %3016 = vst.msk [vmem:[#allocation16 + $0x8] sm:$0xff] %vm543_vm1, %v3010_v9 }
 0xc06 PF: > { %s5096_s24 = sld [smem:[#allocation25_spill]] }
 0xc0c   : > { %p3335_p1 = scmp.ne.s32.totalorder %s5096_s24, 1 }
 0xc0d   : > { %v3023_v26 = vsel (!%p3335_p1), %vm543_vm1, %v3009_v0, 0.0  ;;  %v3026_v15 = vsel (!%p3335_p1), %vm543_vm1, %v3010_v9, 0.0  ;;  %v3336_v12 = vld [vmem:[#allocation5] ss:$0 sm:$0xff] (!%p3335_p1)  ;;  %v3337_v6 = vld [vmem:[#allocation5 + $0x1] ss:$0 sm:$0xff] (!%p3335_p1) }
 0xc0e   : > { %3020 = sbr.rel (%p3335_p1) target bundleno = 3403 (0xd4b), region = 96  ;;  %3024 = vadd.xlane.f32.xlu0 (!%p3335_p1), %v3023_v26 }
 0xc12   : > { %3027 = vadd.xlane.f32.xlu0 (!%p3335_p1), %v3026_v15 }
 0xc9b   : > { %v3025_v49 = vpop.xlane.xlu0 %3024 }
 0xc9c   : > { %v3029_v10 = vmul.f32 0.03125, %v3025_v49 }
 0xc9e   : > { %v3031_v44 = vsub.f32 %v3009_v0, %v3029_v10 }
 0xc9f   : > { %v3028_v2 = vpop.xlane.xlu0 %3027 }
 0xca0   : > { %v3030_v48 = vmul.f32 0.03125, %v3028_v2  ;;  %v3033_v53 = vmul.f32 %v3031_v44, %v3031_v44 }
 0xca2   : > { %v3032_v3 = vsub.f32 %v3010_v9, %v3030_v48  ;;  %v3035_v14 = vsel %vm543_vm1, %v3033_v53, 0.0 }
 0xca3   : > { %3036 = vadd.xlane.f32.xlu1 %v3035_v14 }
 0xca4   : > { %v3034_v59 = vmul.f32 %v3032_v3, %v3032_v3 }
 0xca6   : > { %v3038_v11 = vsel %vm543_vm1, %v3034_v59, 0.0 }
 0xca7   : > { %3039 = vadd.xlane.f32.xlu1 %v3038_v11 }
 0xd30   : > { %v3037_v52 = vpop.xlane.xlu1 %3036 }
 0xd31   : > { %v3041_v62 = vmul.f32 0.03125, %v3037_v52 }
 0xd33   : > { %v3043_v4 = vadd.f32 1e-05, %v3041_v62 }
 0xd34   : > { %v3040_v41 = vpop.xlane.xlu1 %3039 }
 0xd35   : > { %3742 = vrsqrt.f32 %v3043_v4  ;;  %v3042_v54 = vmul.f32 0.03125, %v3040_v41 }
 0xd37   : > { %v3044_v47 = vadd.f32 1e-05, %v3042_v54 }
 0xd39   : > { %3744 = vrsqrt.f32 %v3044_v47 }
 0xd3f   : > { %v3743_v21 = vpop.eup %3742 }
 0xd40   : > { %v3047_v13 = vmul.f32 %v3743_v21, %v3031_v44 }
 0xd42   : > { %v3053_v22 = vmul.f32 %v3336_v12, %v3047_v13 }
 0xd43   : > { %v3745_v23 = vpop.eup %3744 }
 0xd44   : > { %v3059_v51 = vadd.f32 %v3337_v6, %v3053_v22  ;;  %v3048_v16 = vmul.f32 %v3745_v23, %v3032_v3 }
 0xd46   : > { %3061 = vst.msk [vmem:[#allocation16] sm:$0xff] %vm543_vm1, %v3059_v51  ;;  %v3054_v46 = vmul.f32 %v3336_v12, %v3048_v16 }
 0xd48   : > { %v3060_v18 = vadd.f32 %v3337_v6, %v3054_v46 }
 0xd4a   : > { %3062 = vst.msk [vmem:[#allocation16 + $0x8] sm:$0xff] %vm543_vm1, %v3060_v18 }
 0xd4b PF: > { %p3595_p7 = scmp.eq.s32.totalorder %s4178_s11, 1  ;;  %s4102_s15 = smov [#allocation16]  }
 0xd4c   : > { %s3072_s3 = sshll.u32 %s4102_s15, 4  ;;  %s3073_s3 = int_to_ptr.vmem [resolvable:$true] %s3072_s3 }
 0xd4d   : > { %s3980_s22 = scalar_lea.vmem %s3073_s3, 256  ;;  %p3987_p9 = scmp.lt.s32.totalorder %s3073_s3, %s3073_s3 }
 0xd4e   : > { %p3981_p6 = scmp.ne.s32.totalorder %s3073_s3, %s3980_s22  ;;  %p3988_p0 = scmp.lt.s32.totalorder %s3980_s22, %s3980_s22 }
 0xd50   : > { %p3982_p10 = pnand %p3981_p6, %p3595_p7  ;;  %p3989_p4 = por %p3988_p0, %p3987_p9 }
 0xd52   : > { %p3983_p5 = pneg %p3982_p10 }
 0xd54   : > { %p3990_p8 = pnand %p3989_p4, %p3983_p5 }
 0xd56   : > { %3993 = shalt.err (!%p3990_p8)
}
 0xd57   : > { %s5097_s25 = sld [smem:[#allocation33_spill]] }
 0xd5d   : > { %s3994_s28 = scalar_lea.hbm %s5097_s25, 256 }
 0xd5e   : > { %p3995_p3 = scmp.ne.s32.totalorder %s5097_s25, %s3994_s28  ;;  %p4000_p12 = scmp.lt.u32.totalorder %s3994_s28, %s5097_s25 }
 0xd60   : > { %p3996_p13 = pnand %p3995_p3, %p3595_p7 }
 0xd62   : > { %p3997_p11 = pneg %p3996_p13 }
 0xd64   : > { %p4002_p2 = pnand %p4000_p12, %p3997_p11 }
 0xd66   : > { %4005 = shalt.err (!%p4002_p2)
}
 0xd67   : > { %s4103_s10 = smov 128  }
 0xd68   : > { %3559 = dma.vmem_to_hbm [thread:$0]  (%p3595_p7), %s3073_s3, 256, %s5097_s25, [#allocation4], %s4103_s10, %s4103_s10, %s4100_s19  }
 0xd69   : > { %4051 = dma.done.wait (%p3595_p7), [#allocation4], 256  }
 0xd6a   : > { %4053 = vsyncadd (%p3595_p7), [#allocation4], 4294967040 }
 0xd6b PF: > { %s5098_s16 = sld [smem:[#allocation26_spill]]  ;;  %s5099_s27 = sld [smem:[#allocation23_spill]] }
 0xd6c   : > { %s5100_s28 = sld [smem:[#allocation24_spill]]  ;;  %s5101_s29 = sld [smem:[#allocation29_spill]] }
 0xd6d   : > { %s5102_s14 = sld [smem:[#allocation28_spill]]  ;;  %s5103_s30 = smov %s4072_s9 }
 0xd71   : > { %s30_s10 = sadd.s32 1, %s5098_s16  }
 0xd72   : > { %p27_p1 = scmp.ge.s32.totalorder %s30_s10, 4  }
 0xd73   : > { %s5104_s9 = smov %s5102_s14 }
 0xd74   :  { %29 = sbr.rel (!%p27_p1) target bundleno = 16 (0x10), region = 164 }
 0xd7b   :  { %3088 = vsyncpa [#allocation3], 1 }
 0xd7c   :  { %3090 = vsyncpa [#allocation3 + $0x1], 1 }
 0xd7d   :  { %3091 = vsyncpa [#allocation6], 1 }
 0xd7e   :  { %3092 = vsyncpa [#allocation9], 1 }
 0xd7f   :  { %3094 = vsyncpa [#allocation9 + $0x1], 1 }
 0xd80   :  { %3095 = vsyncpa [#allocation12], 1 }
 0xd81   :  { %3097 = vsyncpa [#allocation12 + $0x1], 1 }
 0xd82   :  { %3098 = vsyncpa [#allocation15], 1 }
 0xd83   :  { %3100 = vsyncpa [#allocation15 + $0x1], 1 }
 0xd84   :  { %3101 = vsyncpa [#allocation4], 1 }
 0xd85   :  { %3103 = vsyncpa [#allocation4 + $0x1], 1 }

</bundles_post_ra>
